<compile_context>
chip_gen: v7x
topology: tpu7x:2x2x1
jax: 0.10.0
libtpu: 0.0.40
codegen_flags: <defaults>
</compile_context>

<pallas_src>
import functools
import math

import jax
import jax.numpy as jnp
from jax.experimental import pallas as pl
from jax.experimental.pallas import tpu as pltpu

_VMEM_LIMIT = 48 * 1024 * 1024   # leaves headroom on v7x's 64 MiB per-TC VMEM
_TM_MAX = 512                    # row tile cap
_TN_MAX = 512                    # output lane tile cap (divisor-aware, multiple of 128)
_TK_MAX = 1024                   # contraction tile cap; K<=1024 stays one tile (pre-LN fusion)
_ATTN_BLK_Q = 512                # flash-attention query block
_ATTN_BLK_K = 256                # flash-attention key/value block


def _round_up(x, m):
    return ((x + m - 1) // m) * m


def _tile_for(dim, max_tile, gran):
    """Return (tile, padded_dim).  Whole padded dim if it fits under the cap, else the
    largest multiple of `gran` <= max_tile that divides the padded dim (gran always does)."""
    padded = _round_up(dim, gran)
    if padded <= max_tile:
        return padded, padded
    best = gran
    t = gran
    while t <= max_tile:
        if padded % t == 0:
            best = t
        t += gran
    return best, padded


def _pad2(a, r, c):
    R, C = a.shape
    if R == r and C == c:
        return a
    return jnp.pad(a, ((0, r - R), (0, c - C)))


def _pad_row(v, n):
    v = v.astype(jnp.float32).reshape(1, -1)
    return _pad2(v, 1, n)


# ----------------------------- LayerNorm (row-tiled fallback) ---------------

def _layernorm_kernel(x_ref, g_ref, b_ref, o_ref, *, eps, d_true, d_mask):
    x = x_ref[...].astype(jnp.float32)
    inv = 1.0 / d_true
    mean = jnp.sum(x, axis=-1, keepdims=True) * inv
    xc = x - mean
    if d_mask:
        col = jax.lax.broadcasted_iota(jnp.int32, xc.shape, 1)
        xc = jnp.where(col < d_true, xc, 0.0)
    var = jnp.sum(xc * xc, axis=-1, keepdims=True) * inv
    o_ref[...] = ((xc * jax.lax.rsqrt(var + eps)) * g_ref[...] + b_ref[...]).astype(o_ref.dtype)


def pallas_layernorm(x, gamma, beta, eps=1e-6):
    """LayerNorm over last dim; x:[M,D].  Only used when an LN fusion precondition fails."""
    M, D = x.shape
    D_pad = _round_up(D, 128)
    tm, M_pad = _tile_for(M, _TM_MAX, 8)

    xp = _pad2(x, M_pad, D_pad)
    g = _pad_row(gamma, D_pad)
    b = _pad_row(beta, D_pad)

    out = pl.pallas_call(
        functools.partial(_layernorm_kernel, eps=eps, d_true=int(D), d_mask=(D_pad != D)),
        out_shape=jax.ShapeDtypeStruct((M_pad, D_pad), x.dtype),
        grid=(M_pad // tm,),
        in_specs=[pl.BlockSpec((tm, D_pad), lambda i: (i, 0)),
                  pl.BlockSpec((1, D_pad), lambda i: (0, 0)),
                  pl.BlockSpec((1, D_pad), lambda i: (0, 0))],
        out_specs=pl.BlockSpec((tm, D_pad), lambda i: (i, 0)),
        compiler_params=pltpu.CompilerParams(
            dimension_semantics=("parallel",),
            vmem_limit_bytes=_VMEM_LIMIT),
    )(xp, g, b)
    return out[:M, :D]


# ----------------------------- fused matmul kernel ---------------------------

def _matmul_kernel(*refs, has_bias, fuse_pre_ln, fuse_post_ln, has_res, act,
                   eps, k_true, n_true, single_k, k_mask, n_mask):
    refs = list(refs)
    x_ref = refs.pop(0)
    w_ref = refs.pop(0)
    b_ref = refs.pop(0) if has_bias else None
    if fuse_pre_ln:
        pg_ref = refs.pop(0)
        pb_ref = refs.pop(0)
    if fuse_post_ln:
        gg_ref = refs.pop(0)
        gb_ref = refs.pop(0)
    r_ref = refs.pop(0) if has_res else None
    o_ref = refs.pop(0)
    acc_ref = refs.pop(0) if not single_k else None

    x = x_ref[...]
    if fuse_pre_ln:
        # Two-pass LN over the true K columns; padded lanes are masked out of the stats and
        # gamma/beta are zero-padded, so padded lanes normalize to exactly 0.
        xf = x.astype(jnp.float32)
        inv = 1.0 / k_true
        mean = jnp.sum(xf, axis=-1, keepdims=True) * inv
        xc = xf - mean
        if k_mask:
            col = jax.lax.broadcasted_iota(jnp.int32, xc.shape, 1)
            xc = jnp.where(col < k_true, xc, 0.0)
        var = jnp.sum(xc * xc, axis=-1, keepdims=True) * inv
        x = ((xc * jax.lax.rsqrt(var + eps)) * pg_ref[...] + pb_ref[...]).astype(jnp.bfloat16)
    elif x.dtype != jnp.bfloat16:
        x = x.astype(jnp.bfloat16)

    part = jnp.dot(x, w_ref[...], preferred_element_type=jnp.float32)

    def _epilogue(acc):
        if has_bias:
            acc = acc + b_ref[...]
        if act == "gelu":
            # tanh-approximate GELU (EUP transcendental); tiny deviation from torch's erf GELU.
            c = math.sqrt(2.0 / math.pi)
            acc = 0.5 * acc * (1.0 + jnp.tanh(c * (acc + 0.044715 * acc * acc * acc)))
        if fuse_post_ln:
            inv_n = 1.0 / n_true
            mean = jnp.sum(acc, axis=-1, keepdims=True) * inv_n
            ac = acc - mean
            if n_mask:
                col = jax.lax.broadcasted_iota(jnp.int32, ac.shape, 1)
                ac = jnp.where(col < n_true, ac, 0.0)
            var = jnp.sum(ac * ac, axis=-1, keepdims=True) * inv_n
            acc = (ac * jax.lax.rsqrt(var + eps)) * gg_ref[...] + gb_ref[...]
        if has_res:
            acc = acc + r_ref[...].astype(jnp.float32)
        o_ref[...] = acc.astype(o_ref.dtype)

    if single_k:
        _epilogue(part)
    else:
        kk = pl.program_id(2)

        @pl.when(kk == 0)
        def _init():
            acc_ref[...] = jnp.zeros_like(acc_ref)

        acc_ref[...] += part

        @pl.when(kk == pl.num_programs(2) - 1)
        def _fin():
            _epilogue(acc_ref[...])


def prep_linear(w, b=None, pre_ln=None, post_ln=None):
    """One-time weight/bias/LN prep: bf16 cast + zero-pad to the tile-aligned shapes."""
    K, N = w.shape
    tk, K_pad = _tile_for(K, _TK_MAX, 128)
    tn, N_pad = _tile_for(N, _TN_MAX, 128)
    lin = {
        "K": int(K), "N": int(N), "tk": int(tk), "tn": int(tn),
        "K_pad": int(K_pad), "N_pad": int(N_pad),
        "w": _pad2(w.astype(jnp.bfloat16), K_pad, N_pad),
        "b": None if b is None else _pad_row(b, N_pad),
        "fuse_pre": (pre_ln is not None) and (K_pad == tk),
        "fuse_post": (post_ln is not None) and (N_pad == tn),
    }
    if pre_ln is not None:
        if lin["fuse_pre"]:
            lin["pre_g"] = _pad_row(pre_ln[0], K_pad)
            lin["pre_b"] = _pad_row(pre_ln[1], K_pad)
        else:
            lin["pre_raw"] = (pre_ln[0], pre_ln[1])
    if post_ln is not None:
        if lin["fuse_post"]:
            lin["post_g"] = _pad_row(post_ln[0], N_pad)
            lin["post_b"] = _pad_row(post_ln[1], N_pad)
        else:
            lin["post_raw"] = (post_ln[0], post_ln[1])
    return lin


def pallas_matmul(x, lin, *, act="none", residual=None, out_dtype=jnp.bfloat16, eps=1e-6):
    """out = post_ln(act(pre_ln(x) @ w + b)) + residual, tiled over (M, N, K).

    `lin` is a prepped dict from `prep_linear` (bf16, pre-padded weight + rows).
    Activations stream through HBM in bf16; accumulation is f32 on the MXU.
    """
    M = x.shape[0]
    K, N = lin["K"], lin["N"]
    K_pad, N_pad, tk, tn = lin["K_pad"], lin["N_pad"], lin["tk"], lin["tn"]

    if x.dtype != jnp.bfloat16:
        x = x.astype(jnp.bfloat16)
    if "pre_raw" in lin:   # non-fusible pre-LN (K spans multiple k-tiles): separate LN pass
        x = pallas_layernorm(x, lin["pre_raw"][0], lin["pre_raw"][1], eps=eps).astype(jnp.bfloat16)

    tm, M_pad = _tile_for(M, _TM_MAX, 8)
    xp = _pad2(x, M_pad, K_pad)

    fuse_pre = lin["fuse_pre"]
    fuse_post = lin["fuse_post"]
    has_bias = lin["b"] is not None
    has_res = residual is not None
    single_k = (K_pad == tk)

    args = [xp, lin["w"]]
    in_specs = [pl.BlockSpec((tm, tk), lambda i, j, k: (i, k)),
                pl.BlockSpec((tk, tn), lambda i, j, k: (k, j))]
    if has_bias:
        args.append(lin["b"])
        in_specs.append(pl.BlockSpec((1, tn), lambda i, j, k: (0, j)))
    if fuse_pre:
        args += [lin["pre_g"], lin["pre_b"]]
        in_specs += [pl.BlockSpec((1, tk), lambda i, j, k: (0, k))] * 2
    if fuse_post:
        args += [lin["post_g"], lin["post_b"]]
        in_specs += [pl.BlockSpec((1, tn), lambda i, j, k: (0, j))] * 2
    if has_res:
        rp = residual if residual.dtype == jnp.bfloat16 else residual.astype(jnp.bfloat16)
        args.append(_pad2(rp, M_pad, N_pad))
        in_specs.append(pl.BlockSpec((tm, tn), lambda i, j, k: (i, j)))

    scratch = [] if single_k else [pltpu.VMEM((tm, tn), jnp.float32)]

    out = pl.pallas_call(
        functools.partial(_matmul_kernel, has_bias=has_bias, fuse_pre_ln=fuse_pre,
                          fuse_post_ln=fuse_post, has_res=has_res, act=act,
                          eps=eps, k_true=int(K), n_true=int(N), single_k=single_k,
                          k_mask=fuse_pre and (K_pad != K),
                          n_mask=fuse_post and (N_pad != N)),
        out_shape=jax.ShapeDtypeStruct((M_pad, N_pad), out_dtype),
        grid=(M_pad // tm, N_pad // tn, K_pad // tk),
        in_specs=in_specs,
        out_specs=pl.BlockSpec((tm, tn), lambda i, j, k: (i, j)),
        scratch_shapes=scratch,
        compiler_params=pltpu.CompilerParams(
            dimension_semantics=("parallel", "parallel", "arbitrary"),
            vmem_limit_bytes=_VMEM_LIMIT),
    )(*args)

    out = out[:M, :N]
    if "post_raw" in lin:  # non-fusible post-LN fallback
        out = pallas_layernorm(out, lin["post_raw"][0], lin["post_raw"][1], eps=eps)
    return out


# ----------------------------- flash attention ------------------------------
# Consumes q/k/v in [B, T, D] layout (heads concatenated along D) and writes the output in
# the same layout -> no head transposes and no head_dim lane padding.  K/V are streamed once
# per q-block for ALL heads; per-head online softmax state lives in VMEM scratch.

def _attn_kernel(q_ref, k_ref, v_ref, o_ref, m_ref, l_ref, acc_ref, *,
                 scale, nh, hd, kv_true, blk_k, need_mask):
    ki = pl.program_id(2)

    @pl.when(ki == 0)
    def _init():
        m_ref[...] = jnp.full_like(m_ref, -1e30)
        l_ref[...] = jnp.zeros_like(l_ref)
        acc_ref[...] = jnp.zeros_like(acc_ref)

    q = q_ref[0]          # (blk_q, D) bf16
    k = k_ref[0]          # (blk_k, D) bf16
    v = v_ref[0]          # (blk_k, D) bf16

    if need_mask:
        col = ki * blk_k + jax.lax.broadcasted_iota(jnp.int32, (1, blk_k), 1)
        mask_bias = jnp.where(col < kv_true, 0.0, -1e30)      # (1, blk_k), additive

    for h in range(nh):
        hs = h * hd
        qh = (q[:, hs:hs + hd].astype(jnp.float32) * scale).astype(jnp.bfloat16)
        kh = k[:, hs:hs + hd]
        vh = v[:, hs:hs + hd]
        s = jax.lax.dot_general(qh, kh, (((1,), (1,)), ((), ())),
                                preferred_element_type=jnp.float32)    # (blk_q, blk_k)
        if need_mask:
            s = s + mask_bias

        m_prev = m_ref[:, h:h + 1]                                     # (blk_q, 1)
        m_new = jnp.maximum(m_prev, jnp.max(s, axis=-1, keepdims=True))
        alpha = jnp.exp(m_prev - m_new)
        p = jnp.exp(s - m_new)
        l_ref[:, h:h + 1] = alpha * l_ref[:, h:h + 1] + jnp.sum(p, axis=-1, keepdims=True)
        acc_ref[h] = alpha * acc_ref[h] + jnp.dot(p.astype(jnp.bfloat16), vh,
                                                  preferred_element_type=jnp.float32)
        m_ref[:, h:h + 1] = m_new

    @pl.when(ki == pl.num_programs(2) - 1)
    def _finalize():
        outs = [acc_ref[h] * pl.reciprocal(l_ref[:, h:h + 1], approx=True)
                for h in range(nh)]
        o_ref[0] = jnp.concatenate(outs, axis=-1).astype(o_ref.dtype)   # lane-dense D-wide store


def pallas_attention(q, k, v, num_heads, scale):
    """Multi-head softmax((q*scale) @ k^T) @ v; q,k,v,out: [B, T, D] (heads along D), bf16."""
    B, T, D = q.shape
    hd = D // num_heads
    T8 = _round_up(T, 8)
    if T8 <= _ATTN_BLK_Q:
        blk_q = blk_k = T8
        T_pad = T8
    else:
        blk_q, blk_k = _ATTN_BLK_Q, _ATTN_BLK_K
        T_pad = _round_up(T, blk_q)          # blk_q is a multiple of blk_k
    need_mask = (T_pad != T)
    if need_mask:
        pad = ((0, 0), (0, T_pad - T), (0, 0))
        q, k, v = jnp.pad(q, pad), jnp.pad(k, pad), jnp.pad(v, pad)

    out = pl.pallas_call(
        functools.partial(_attn_kernel, scale=scale, nh=num_heads, hd=hd,
                          kv_true=int(T), blk_k=blk_k, need_mask=need_mask),
        out_shape=jax.ShapeDtypeStruct((B, T_pad, D), q.dtype),
        grid=(B, T_pad // blk_q, T_pad // blk_k),
        in_specs=[pl.BlockSpec((1, blk_q, D), lambda b, qi, ki: (b, qi, 0)),
                  pl.BlockSpec((1, blk_k, D), lambda b, qi, ki: (b, ki, 0)),
                  pl.BlockSpec((1, blk_k, D), lambda b, qi, ki: (b, ki, 0))],
        out_specs=pl.BlockSpec((1, blk_q, D), lambda b, qi, ki: (b, qi, 0)),
        scratch_shapes=[pltpu.VMEM((blk_q, num_heads), jnp.float32),
                        pltpu.VMEM((blk_q, num_heads), jnp.float32),
                        pltpu.VMEM((num_heads, blk_q, hd), jnp.float32)],
        compiler_params=pltpu.CompilerParams(
            dimension_semantics=("parallel", "parallel", "arbitrary"),
            vmem_limit_bytes=_VMEM_LIMIT),
    )(q, k, v)
    return out[:, :T, :] if need_mask else out


# ----------------------------- model (glue + kernels) ----------------------

CFG = dict(img_size=32, patch_size=16, in_chans=3, embed_dim=32,
           depth=2, num_heads=2, mlp_ratio=4, out_chans=32)


def init_params(key, cfg):
    D, C_in, P = cfg["embed_dim"], cfg["in_chans"], cfg["patch_size"]
    Hp = Wp = cfg["img_size"] // P
    mlp_dim = cfg["mlp_ratio"] * D
    Co = cfg["out_chans"]

    keys = iter(jax.random.split(key, 64))
    w = lambda shape: (0.02 * jax.random.normal(next(keys), shape, jnp.float32))

    params = {
        "patch_w": w((D, C_in, P, P)),                 # Conv2d weight (torch layout)
        "patch_b": jnp.zeros((D,), jnp.float32),
        "pos_embed": w((1, Hp, Wp, D)),
        "blocks": [],
        "neck_conv1_w": w((Co, D, 1, 1)),              # 1x1 conv, bias=False
        "neck_ln1_g": jnp.ones((Co,), jnp.float32),
        "neck_ln1_b": jnp.zeros((Co,), jnp.float32),
        "neck_conv2_w": w((Co, Co, 3, 3)),             # 3x3 conv, bias=False
        "neck_ln2_g": jnp.ones((Co,), jnp.float32),
        "neck_ln2_b": jnp.zeros((Co,), jnp.float32),
    }
    for _ in range(cfg["depth"]):
        params["blocks"].append({
            "ln1_g": jnp.ones((D,), jnp.float32), "ln1_b": jnp.zeros((D,), jnp.float32),
            "qkv_w": w((D, 3 * D)), "qkv_b": jnp.zeros((3 * D,), jnp.float32),
            "proj_w": w((D, D)), "proj_b": jnp.zeros((D,), jnp.float32),
            "ln2_g": jnp.ones((D,), jnp.float32), "ln2_b": jnp.zeros((D,), jnp.float32),
            "mlp_w1": w((D, mlp_dim)), "mlp_b1": jnp.zeros((mlp_dim,), jnp.float32),
            "mlp_w2": w((mlp_dim, D)), "mlp_b2": jnp.zeros((D,), jnp.float32),
        })
    return params


def prepare_params(params, cfg):
    """One-time prep: bf16-cast + tile-pad all weights, split qkv, pre-pad bias/LN rows."""
    D, C_in, P, Co = cfg["embed_dim"], cfg["in_chans"], cfg["patch_size"], cfg["out_chans"]
    prep = {}

    w_flat = params["patch_w"].reshape(D, C_in * P * P).T        # [C*P*P, D]
    prep["patch"] = prep_linear(w_flat, params["patch_b"])
    prep["pos_embed"] = params["pos_embed"].astype(jnp.bfloat16)

    blocks = []
    for bp in params["blocks"]:
        qw, kw, vw = jnp.split(bp["qkv_w"], 3, axis=1)
        qb, kb, vb = jnp.split(bp["qkv_b"], 3)
        ln1 = (bp["ln1_g"], bp["ln1_b"])
        ln2 = (bp["ln2_g"], bp["ln2_b"])
        blocks.append({
            "q": prep_linear(qw, qb, pre_ln=ln1),
            "k": prep_linear(kw, kb, pre_ln=ln1),
            "v": prep_linear(vw, vb, pre_ln=ln1),
            "proj": prep_linear(bp["proj_w"], bp["proj_b"]),
            "fc1": prep_linear(bp["mlp_w1"], bp["mlp_b1"], pre_ln=ln2),
            "fc2": prep_linear(bp["mlp_w2"], bp["mlp_b2"]),
        })
    prep["blocks"] = blocks

    w1 = params["neck_conv1_w"].reshape(Co, D).T                 # [D, Co]
    prep["neck1"] = prep_linear(w1, None, post_ln=(params["neck_ln1_g"], params["neck_ln1_b"]))
    w2 = params["neck_conv2_w"].transpose(2, 3, 1, 0).reshape(9 * Co, Co)   # (kh,kw,cin) order
    prep["neck2"] = prep_linear(w2, None, post_ln=(params["neck_ln2_g"], params["neck_ln2_b"]))
    return prep


def block_forward(x, blk, num_heads):
    # x: [B, T, D] bf16
    B, T, D = x.shape
    hd = D // num_heads
    x2 = x.reshape(B * T, D)

    # q/k/v projections (LN1 fused into each; qkv weight pre-split at prepare time).
    q = pallas_matmul(x2, blk["q"])
    k = pallas_matmul(x2, blk["k"])
    v = pallas_matmul(x2, blk["v"])

    # Attention directly in [B, T, D] layout: no head transposes, no head_dim padding.
    o = pallas_attention(q.reshape(B, T, D), k.reshape(B, T, D), v.reshape(B, T, D),
                         num_heads, scale=hd ** -0.5)
    o = o.reshape(B * T, D)

    # output projection with the residual add fused into the epilogue
    x2 = pallas_matmul(o, blk["proj"], residual=x2)

    # LN2 fused into fc1 (+ GELU); residual fused into fc2 epilogue
    h = pallas_matmul(x2, blk["fc1"], act="gelu")
    x2 = pallas_matmul(h, blk["fc2"], residual=x2)
    return x2.reshape(B, T, D)


def neck_forward(tokens, B, Hp, Wp, prep, cfg):
    # tokens: [B*Hp*Wp, D] bf16
    Co = cfg["out_chans"]

    # 1x1 conv (bias=False) == matmul, with LayerNorm2d fused into the epilogue
    h = pallas_matmul(tokens, prep["neck1"])

    # 3x3 conv (padding=1, bias=False) via im2col + fused matmul+LayerNorm2d (bf16 im2col).
    # TODO(synk): halo-tiled Pallas 3x3 conv would avoid materializing the 9*Co im2col tensor.
    hmap = h.reshape(B, Hp, Wp, Co)
    hpad = jnp.pad(hmap, ((0, 0), (1, 1), (1, 1), (0, 0)))
    cols = [hpad[:, di:di + Hp, dj:dj + Wp, :] for di in range(3) for dj in range(3)]
    cols = jnp.concatenate(cols, axis=-1).reshape(B * Hp * Wp, 9 * Co)
    out = pallas_matmul(cols, prep["neck2"], out_dtype=jnp.float32)

    return out.reshape(B, Hp, Wp, Co).transpose(0, 3, 1, 2)        # NCHW f32 out


def sam_vit_forward(x_nchw, prep, cfg=CFG):
    B, C, H, W = x_nchw.shape
    P, D = cfg["patch_size"], cfg["embed_dim"]
    Hp, Wp = H // P, W // P

    # im2col for the stride-16 16x16 patch conv: [B*Hp*Wp, C*P*P]
    patches = (x_nchw.reshape(B, C, Hp, P, Wp, P)
               .transpose(0, 2, 4, 1, 3, 5)
               .reshape(B * Hp * Wp, C * P * P))
    tok = pallas_matmul(patches, prep["patch"])                    # bf16 [B*T, D]

    x = tok.reshape(B, Hp, Wp, D) + prep["pos_embed"]              # absolute pos embed (bf16)
    x = x.reshape(B, Hp * Wp, D)                                   # global attention
    for blk in prep["blocks"]:
        x = block_forward(x, blk, cfg["num_heads"])
    return neck_forward(x.reshape(B * Hp * Wp, D), B, Hp, Wp, prep, cfg)


# ------------------------------------ main ---------------------------------

if __name__ == "__main__":
    key = jax.random.PRNGKey(0)
    pkey, xkey = jax.random.split(key)
    params = init_params(pkey, CFG)
    # One-time bf16 cast + tile padding of weights/bias/LN rows (not repeated per forward).
    prepped = prepare_params(params, CFG)

    x = jax.random.normal(xkey, (2, CFG["in_chans"], CFG["img_size"], CFG["img_size"]),
                          jnp.float32)               # NCHW, like PyTorch

    fwd = jax.jit(lambda xx: sam_vit_forward(xx, prepped, CFG))
    out = jax.block_until_ready(fwd(x))

    expected = (2, CFG["out_chans"], CFG["img_size"] // CFG["patch_size"],
                CFG["img_size"] // CFG["patch_size"])
    assert out.shape == expected, (out.shape, expected)
    assert bool(jnp.all(jnp.isfinite(out)))
    print("KERNEL_OK")
</pallas_src>

<mosaic_0001>
module attributes {stable_mosaic.version = 11 : i64} {
  func.func @_matmul_kernel(%arg0: i32, %arg1: i32, %arg2: i32, %arg3: memref<8x768xbf16, #tpu.memory_space<vmem>>, %arg4: memref<768x128xbf16, #tpu.memory_space<vmem>>, %arg5: memref<1x128xf32, #tpu.memory_space<vmem>>, %arg6: memref<8x128xbf16, #tpu.memory_space<vmem>>) attributes {dimension_semantics = [#tpu.dimension_semantics<parallel>, #tpu.dimension_semantics<parallel>, #tpu.dimension_semantics<arbitrary>], iteration_bounds = array<i64: 1, 1, 1>, scalar_prefetch = 0 : i64, scratch_operands = 0 : i64, tpu.core_type = #tpu.core_type<tc>, window_params = [{transform_indices = @transform_0, window_bounds = array<i64: 8, 768>}, {transform_indices = @transform_1, window_bounds = array<i64: 768, 128>}, {transform_indices = @transform_2, window_bounds = array<i64: 1, 128>}, {transform_indices = @transform_3, window_bounds = array<i64: 8, 128>}]} {
    %c0 = arith.constant 0 : index
    %c0_0 = arith.constant 0 : index
    %0 = vector.load %arg3[%c0, %c0_0] : memref<8x768xbf16, #tpu.memory_space<vmem>>, vector<8x768xbf16>
    %c0_1 = arith.constant 0 : index
    %c0_2 = arith.constant 0 : index
    %1 = vector.load %arg4[%c0_1, %c0_2] : memref<768x128xbf16, #tpu.memory_space<vmem>>, vector<768x128xbf16>
    %cst = arith.constant dense<0.000000e+00> : vector<8x128xf32>
    %2 = tpu.matmul %0, %1, %cst {dimension_numbers = #tpu.dot_dimension_numbers<[1], [0], [0], [1], [0, 0, 1, 1], [], []>} : vector<8x768xbf16>, vector<768x128xbf16>, vector<8x128xf32> -> vector<8x128xf32>
    %c0_3 = arith.constant 0 : index
    %c0_4 = arith.constant 0 : index
    %3 = vector.load %arg5[%c0_3, %c0_4] : memref<1x128xf32, #tpu.memory_space<vmem>>, vector<1x128xf32>
    %4 = vector.broadcast %3 : vector<1x128xf32> to vector<8x128xf32>
    %5 = arith.addf %2, %4 : vector<8x128xf32>
    %6 = arith.truncf %5 : vector<8x128xf32> to vector<8x128xbf16>
    %c0_5 = arith.constant 0 : index
    %c0_6 = arith.constant 0 : index
    %7 = vector.load %arg6[%c0_5, %c0_6] : memref<8x128xbf16, #tpu.memory_space<vmem>>, vector<8x128xbf16>
    tpu.vector_store %arg6[%c0_5, %c0_6], %6 {strides = array<i32>} : memref<8x128xbf16, #tpu.memory_space<vmem>>, vector<8x128xbf16>,
    return
  }
  func.func @transform_0(%arg0: i32, %arg1: i32, %arg2: i32) -> (i32, i32) {
    %c0_i32 = arith.constant 0 : i32
    return %arg0, %arg2 : i32, i32
  }
  func.func @transform_1(%arg0: i32, %arg1: i32, %arg2: i32) -> (i32, i32) {
    %c0_i32 = arith.constant 0 : i32
    return %arg2, %arg1 : i32, i32
  }
  func.func @transform_2(%arg0: i32, %arg1: i32, %arg2: i32) -> (i32, i32) {
    %c0_i32 = arith.constant 0 : i32
    %c0_i32_0 = arith.constant 0 : i32
    return %c0_i32, %arg1 : i32, i32
  }
  func.func @transform_3(%arg0: i32, %arg1: i32, %arg2: i32) -> (i32, i32) {
    %c0_i32 = arith.constant 0 : i32
    return %arg0, %arg1 : i32, i32
  }
}

module attributes {stable_mosaic.version = 11 : i64} {
  func.func @_matmul_kernel(%arg0: i32, %arg1: i32, %arg2: i32, %arg3: memref<8x128xbf16, #tpu.memory_space<vmem>>, %arg4: memref<128x128xbf16, #tpu.memory_space<vmem>>, %arg5: memref<1x128xf32, #tpu.memory_space<vmem>>, %arg6: memref<1x128xf32, #tpu.memory_space<vmem>>, %arg7: memref<1x128xf32, #tpu.memory_space<vmem>>, %arg8: memref<8x128xbf16, #tpu.memory_space<vmem>>) attributes {dimension_semantics = [#tpu.dimension_semantics<parallel>, #tpu.dimension_semantics<parallel>, #tpu.dimension_semantics<arbitrary>], iteration_bounds = array<i64: 1, 1, 1>, scalar_prefetch = 0 : i64, scratch_operands = 0 : i64, tpu.core_type = #tpu.core_type<tc>, window_params = [{transform_indices = @transform_0, window_bounds = array<i64: 8, 128>}, {transform_indices = @transform_1, window_bounds = array<i64: 128, 128>}, {transform_indices = @transform_2, window_bounds = array<i64: 1, 128>}, {transform_indices = @transform_3, window_bounds = array<i64: 1, 128>}, {transform_indices = @transform_4, window_bounds = array<i64: 1, 128>}, {transform_indices = @transform_5, window_bounds = array<i64: 8, 128>}]} {
    %c0 = arith.constant 0 : index
    %c0_0 = arith.constant 0 : index
    %0 = vector.load %arg3[%c0, %c0_0] : memref<8x128xbf16, #tpu.memory_space<vmem>>, vector<8x128xbf16>
    %1 = arith.extf %0 : vector<8x128xbf16> to vector<8x128xf32>
    %cst = arith.constant dense<0.000000e+00> : vector<8xf32>
    %2 = vector.multi_reduction <add>, %1, %cst [1] : vector<8x128xf32> to vector<8xf32>
    %3 = vector.shape_cast %2 : vector<8xf32> to vector<8x1xf32>
    %cst_1 = arith.constant 3.125000e-02 : f32
    %4 = vector.broadcast %cst_1 : f32 to vector<8x1xf32>
    %5 = arith.mulf %3, %4 : vector<8x1xf32>
    %6 = vector.broadcast %5 : vector<8x1xf32> to vector<8x128xf32>
    %7 = arith.subf %1, %6 : vector<8x128xf32>
    %8 = tpu.iota {dimensions = array<i32: 1>} : vector<8x128xi32>
    %c32_i32 = arith.constant 32 : i32
    %9 = vector.broadcast %c32_i32 : i32 to vector<8x128xi32>
    %10 = arith.cmpi slt, %8, %9 : vector<8x128xi32>
    %cst_2 = arith.constant 0.000000e+00 : f32
    %11 = vector.broadcast %cst_2 : f32 to vector<8x128xf32>
    %12 = arith.select %10, %7, %11 : vector<8x128xi1>, vector<8x128xf32>
    %13 = arith.mulf %12, %12 : vector<8x128xf32>
    %cst_3 = arith.constant dense<0.000000e+00> : vector<8xf32>
    %14 = vector.multi_reduction <add>, %13, %cst_3 [1] : vector<8x128xf32> to vector<8xf32>
    %15 = vector.shape_cast %14 : vector<8xf32> to vector<8x1xf32>
    %cst_4 = arith.constant 3.125000e-02 : f32
    %16 = vector.broadcast %cst_4 : f32 to vector<8x1xf32>
    %17 = arith.mulf %15, %16 : vector<8x1xf32>
    %cst_5 = arith.constant 9.99999997E-7 : f32
    %18 = vector.broadcast %cst_5 : f32 to vector<8x1xf32>
    %19 = arith.addf %17, %18 : vector<8x1xf32>
    %20 = math.rsqrt %19 : vector<8x1xf32>
    %21 = vector.broadcast %20 : vector<8x1xf32> to vector<8x128xf32>
    %22 = arith.mulf %12, %21 : vector<8x128xf32>
    %c0_6 = arith.constant 0 : index
    %c0_7 = arith.constant 0 : index
    %23 = vector.load %arg6[%c0_6, %c0_7] : memref<1x128xf32, #tpu.memory_space<vmem>>, vector<1x128xf32>
    %24 = vector.broadcast %23 : vector<1x128xf32> to vector<8x128xf32>
    %25 = arith.mulf %22, %24 : vector<8x128xf32>
    %c0_8 = arith.constant 0 : index
    %c0_9 = arith.constant 0 : index
    %26 = vector.load %arg7[%c0_8, %c0_9] : memref<1x128xf32, #tpu.memory_space<vmem>>, vector<1x128xf32>
    %27 = vector.broadcast %26 : vector<1x128xf32> to vector<8x128xf32>
    %28 = arith.addf %25, %27 : vector<8x128xf32>
    %29 = arith.truncf %28 : vector<8x128xf32> to vector<8x128xbf16>
    %c0_10 = arith.constant 0 : index
    %c0_11 = arith.constant 0 : index
    %30 = vector.load %arg4[%c0_10, %c0_11] : memref<128x128xbf16, #tpu.memory_space<vmem>>, vector<128x128xbf16>
    %cst_12 = arith.constant dense<0.000000e+00> : vector<8x128xf32>
    %31 = tpu.matmul %29, %30, %cst_12 {dimension_numbers = #tpu.dot_dimension_numbers<[1], [0], [0], [1], [0, 0, 1, 1], [], []>} : vector<8x128xbf16>, vector<128x128xbf16>, vector<8x128xf32> -> vector<8x128xf32>
    %c0_13 = arith.constant 0 : index
    %c0_14 = arith.constant 0 : index
    %32 = vector.load %arg5[%c0_13, %c0_14] : memref<1x128xf32, #tpu.memory_space<vmem>>, vector<1x128xf32>
    %33 = vector.broadcast %32 : vector<1x128xf32> to vector<8x128xf32>
    %34 = arith.addf %31, %33 : vector<8x128xf32>
    %35 = arith.truncf %34 : vector<8x128xf32> to vector<8x128xbf16>
    %c0_15 = arith.constant 0 : index
    %c0_16 = arith.constant 0 : index
    %36 = vector.load %arg8[%c0_15, %c0_16] : memref<8x128xbf16, #tpu.memory_space<vmem>>, vector<8x128xbf16>
    tpu.vector_store %arg8[%c0_15, %c0_16], %35 {strides = array<i32>} : memref<8x128xbf16, #tpu.memory_space<vmem>>, vector<8x128xbf16>,
    return
  }
  func.func @transform_0(%arg0: i32, %arg1: i32, %arg2: i32) -> (i32, i32) {
    %c0_i32 = arith.constant 0 : i32
    return %arg0, %arg2 : i32, i32
  }
  func.func @transform_1(%arg0: i32, %arg1: i32, %arg2: i32) -> (i32, i32) {
    %c0_i32 = arith.constant 0 : i32
    return %arg2, %arg1 : i32, i32
  }
  func.func @transform_2(%arg0: i32, %arg1: i32, %arg2: i32) -> (i32, i32) {
    %c0_i32 = arith.constant 0 : i32
    %c0_i32_0 = arith.constant 0 : i32
    return %c0_i32, %arg1 : i32, i32
  }
  func.func @transform_3(%arg0: i32, %arg1: i32, %arg2: i32) -> (i32, i32) {
    %c0_i32 = arith.constant 0 : i32
    %c0_i32_0 = arith.constant 0 : i32
    return %c0_i32, %arg2 : i32, i32
  }
  func.func @transform_4(%arg0: i32, %arg1: i32, %arg2: i32) -> (i32, i32) {
    %c0_i32 = arith.constant 0 : i32
    %c0_i32_0 = arith.constant 0 : i32
    return %c0_i32, %arg2 : i32, i32
  }
  func.func @transform_5(%arg0: i32, %arg1: i32, %arg2: i32) -> (i32, i32) {
    %c0_i32 = arith.constant 0 : i32
    return %arg0, %arg1 : i32, i32
  }
}

module attributes {stable_mosaic.version = 11 : i64} {
  func.func @_matmul_kernel(%arg0: i32, %arg1: i32, %arg2: i32, %arg3: memref<8x128xbf16, #tpu.memory_space<vmem>>, %arg4: memref<128x128xbf16, #tpu.memory_space<vmem>>, %arg5: memref<1x128xf32, #tpu.memory_space<vmem>>, %arg6: memref<8x128xbf16, #tpu.memory_space<vmem>>, %arg7: memref<8x128xbf16, #tpu.memory_space<vmem>>) attributes {dimension_semantics = [#tpu.dimension_semantics<parallel>, #tpu.dimension_semantics<parallel>, #tpu.dimension_semantics<arbitrary>], iteration_bounds = array<i64: 1, 1, 1>, scalar_prefetch = 0 : i64, scratch_operands = 0 : i64, tpu.core_type = #tpu.core_type<tc>, window_params = [{transform_indices = @transform_0, window_bounds = array<i64: 8, 128>}, {transform_indices = @transform_1, window_bounds = array<i64: 128, 128>}, {transform_indices = @transform_2, window_bounds = array<i64: 1, 128>}, {transform_indices = @transform_3, window_bounds = array<i64: 8, 128>}, {transform_indices = @transform_4, window_bounds = array<i64: 8, 128>}]} {
    %c0 = arith.constant 0 : index
    %c0_0 = arith.constant 0 : index
    %0 = vector.load %arg3[%c0, %c0_0] : memref<8x128xbf16, #tpu.memory_space<vmem>>, vector<8x128xbf16>
    %c0_1 = arith.constant 0 : index
    %c0_2 = arith.constant 0 : index
    %1 = vector.load %arg4[%c0_1, %c0_2] : memref<128x128xbf16, #tpu.memory_space<vmem>>, vector<128x128xbf16>
    %cst = arith.constant dense<0.000000e+00> : vector<8x128xf32>
    %2 = tpu.matmul %0, %1, %cst {dimension_numbers = #tpu.dot_dimension_numbers<[1], [0], [0], [1], [0, 0, 1, 1], [], []>} : vector<8x128xbf16>, vector<128x128xbf16>, vector<8x128xf32> -> vector<8x128xf32>
    %c0_3 = arith.constant 0 : index
    %c0_4 = arith.constant 0 : index
    %3 = vector.load %arg5[%c0_3, %c0_4] : memref<1x128xf32, #tpu.memory_space<vmem>>, vector<1x128xf32>
    %4 = vector.broadcast %3 : vector<1x128xf32> to vector<8x128xf32>
    %5 = arith.addf %2, %4 : vector<8x128xf32>
    %c0_5 = arith.constant 0 : index
    %c0_6 = arith.constant 0 : index
    %6 = vector.load %arg6[%c0_5, %c0_6] : memref<8x128xbf16, #tpu.memory_space<vmem>>, vector<8x128xbf16>
    %7 = arith.extf %6 : vector<8x128xbf16> to vector<8x128xf32>
    %8 = arith.addf %5, %7 : vector<8x128xf32>
    %9 = arith.truncf %8 : vector<8x128xf32> to vector<8x128xbf16>
    %c0_7 = arith.constant 0 : index
    %c0_8 = arith.constant 0 : index
    %10 = vector.load %arg7[%c0_7, %c0_8] : memref<8x128xbf16, #tpu.memory_space<vmem>>, vector<8x128xbf16>
    tpu.vector_store %arg7[%c0_7, %c0_8], %9 {strides = array<i32>} : memref<8x128xbf16, #tpu.memory_space<vmem>>, vector<8x128xbf16>,
    return
  }
  func.func @transform_0(%arg0: i32, %arg1: i32, %arg2: i32) -> (i32, i32) {
    %c0_i32 = arith.constant 0 : i32
    return %arg0, %arg2 : i32, i32
  }
  func.func @transform_1(%arg0: i32, %arg1: i32, %arg2: i32) -> (i32, i32) {
    %c0_i32 = arith.constant 0 : i32
    return %arg2, %arg1 : i32, i32
  }
  func.func @transform_2(%arg0: i32, %arg1: i32, %arg2: i32) -> (i32, i32) {
    %c0_i32 = arith.constant 0 : i32
    %c0_i32_0 = arith.constant 0 : i32
    return %c0_i32, %arg1 : i32, i32
  }
  func.func @transform_3(%arg0: i32, %arg1: i32, %arg2: i32) -> (i32, i32) {
    %c0_i32 = arith.constant 0 : i32
    return %arg0, %arg1 : i32, i32
  }
  func.func @transform_4(%arg0: i32, %arg1: i32, %arg2: i32) -> (i32, i32) {
    %c0_i32 = arith.constant 0 : i32
    return %arg0, %arg1 : i32, i32
  }
}

module attributes {stable_mosaic.version = 11 : i64} {
  func.func @_attn_kernel(%arg0: i32, %arg1: i32, %arg2: i32, %arg3: memref<1x8x32xbf16, #tpu.memory_space<vmem>>, %arg4: memref<1x8x32xbf16, #tpu.memory_space<vmem>>, %arg5: memref<1x8x32xbf16, #tpu.memory_space<vmem>>, %arg6: memref<1x8x32xbf16, #tpu.memory_space<vmem>>, %arg7: memref<8x2xf32, #tpu.memory_space<vmem>>, %arg8: memref<8x2xf32, #tpu.memory_space<vmem>>, %arg9: memref<2x8x16xf32, #tpu.memory_space<vmem>>) attributes {dimension_semantics = [#tpu.dimension_semantics<parallel>, #tpu.dimension_semantics<parallel>, #tpu.dimension_semantics<arbitrary>], iteration_bounds = array<i64: 2, 1, 1>, scalar_prefetch = 0 : i64, scratch_operands = 3 : i64, tpu.core_type = #tpu.core_type<tc>, window_params = [{transform_indices = @transform_0, window_bounds = array<i64: 1, 8, 32>}, {transform_indices = @transform_1, window_bounds = array<i64: 1, 8, 32>}, {transform_indices = @transform_2, window_bounds = array<i64: 1, 8, 32>}, {transform_indices = @transform_3, window_bounds = array<i64: 1, 8, 32>}]} {
    %c0_i32 = arith.constant 0 : i32
    %0 = arith.cmpi eq, %arg2, %c0_i32 : i32
    %1 = arith.extui %0 : i1 to i32
    %c0_i32_0 = arith.constant 0 : i32
    %2 = arith.cmpi ne, %1, %c0_i32_0 : i32
    scf.if %2 {
      %cst_49 = arith.constant -1.000000e+30 : f32
      %93 = vector.broadcast %cst_49 : f32 to vector<8x2xf32>
      %c0_50 = arith.constant 0 : index
      %c0_51 = arith.constant 0 : index
      %94 = vector.load %arg7[%c0_50, %c0_51] : memref<8x2xf32, #tpu.memory_space<vmem>>, vector<8x2xf32>
      tpu.vector_store %arg7[%c0_50, %c0_51], %93 {strides = array<i32>} : memref<8x2xf32, #tpu.memory_space<vmem>>, vector<8x2xf32>,
      %cst_52 = arith.constant 0.000000e+00 : f32
      %95 = vector.broadcast %cst_52 : f32 to vector<8x2xf32>
      %c0_53 = arith.constant 0 : index
      %c0_54 = arith.constant 0 : index
      %96 = vector.load %arg8[%c0_53, %c0_54] : memref<8x2xf32, #tpu.memory_space<vmem>>, vector<8x2xf32>
      tpu.vector_store %arg8[%c0_53, %c0_54], %95 {strides = array<i32>} : memref<8x2xf32, #tpu.memory_space<vmem>>, vector<8x2xf32>,
      %cst_55 = arith.constant 0.000000e+00 : f32
      %97 = vector.broadcast %cst_55 : f32 to vector<2x8x16xf32>
      %c0_56 = arith.constant 0 : index
      %c0_57 = arith.constant 0 : index
      %c0_58 = arith.constant 0 : index
      %98 = vector.load %arg9[%c0_56, %c0_57, %c0_58] : memref<2x8x16xf32, #tpu.memory_space<vmem>>, vector<2x8x16xf32>
      tpu.vector_store %arg9[%c0_56, %c0_57, %c0_58], %97 {strides = array<i32>} : memref<2x8x16xf32, #tpu.memory_space<vmem>>, vector<2x8x16xf32>,
    } else {
    }
    %c0 = arith.constant 0 : index
    %c0_1 = arith.constant 0 : index
    %c0_2 = arith.constant 0 : index
    %3 = vector.load %arg3[%c0, %c0_1, %c0_2] : memref<1x8x32xbf16, #tpu.memory_space<vmem>>, vector<1x8x32xbf16>
    %4 = vector.shape_cast %3 : vector<1x8x32xbf16> to vector<8x32xbf16>
    %c0_3 = arith.constant 0 : index
    %c0_4 = arith.constant 0 : index
    %c0_5 = arith.constant 0 : index
    %5 = vector.load %arg4[%c0_3, %c0_4, %c0_5] : memref<1x8x32xbf16, #tpu.memory_space<vmem>>, vector<1x8x32xbf16>
    %6 = vector.shape_cast %5 : vector<1x8x32xbf16> to vector<8x32xbf16>
    %c0_6 = arith.constant 0 : index
    %c0_7 = arith.constant 0 : index
    %c0_8 = arith.constant 0 : index
    %7 = vector.load %arg5[%c0_6, %c0_7, %c0_8] : memref<1x8x32xbf16, #tpu.memory_space<vmem>>, vector<1x8x32xbf16>
    %8 = vector.shape_cast %7 : vector<1x8x32xbf16> to vector<8x32xbf16>
    %c8_i32 = arith.constant 8 : i32
    %9 = arith.muli %arg2, %c8_i32 : i32
    %10 = tpu.iota {dimensions = array<i32: 1>} : vector<1x8xi32>
    %11 = vector.broadcast %9 : i32 to vector<1x8xi32>
    %12 = arith.addi %11, %10 : vector<1x8xi32>
    %c4_i32 = arith.constant 4 : i32
    %13 = vector.broadcast %c4_i32 : i32 to vector<1x8xi32>
    %14 = arith.cmpi slt, %12, %13 : vector<1x8xi32>
    %cst = arith.constant 0.000000e+00 : f32
    %cst_9 = arith.constant -1.000000e+30 : f32
    %15 = vector.broadcast %cst : f32 to vector<1x8xf32>
    %16 = vector.broadcast %cst_9 : f32 to vector<1x8xf32>
    %17 = arith.select %14, %15, %16 : vector<1x8xi1>, vector<1x8xf32>
    %18 = vector.extract_strided_slice %4 {offsets = [0, 0], sizes = [8, 16], strides = [1, 1]} : vector<8x32xbf16> to vector<8x16xbf16>
    %19 = arith.extf %18 : vector<8x16xbf16> to vector<8x16xf32>
    %cst_10 = arith.constant 2.500000e-01 : f32
    %20 = vector.broadcast %cst_10 : f32 to vector<8x16xf32>
    %21 = arith.mulf %19, %20 : vector<8x16xf32>
    %22 = arith.truncf %21 : vector<8x16xf32> to vector<8x16xbf16>
    %23 = vector.extract_strided_slice %6 {offsets = [0, 0], sizes = [8, 16], strides = [1, 1]} : vector<8x32xbf16> to vector<8x16xbf16>
    %24 = vector.extract_strided_slice %8 {offsets = [0, 0], sizes = [8, 16], strides = [1, 1]} : vector<8x32xbf16> to vector<8x16xbf16>
    %cst_11 = arith.constant dense<0.000000e+00> : vector<8x8xf32>
    %25 = tpu.matmul %22, %23, %cst_11 {dimension_numbers = #tpu.dot_dimension_numbers<[1], [1], [0], [0], [0, 0, 1, 0], [], []>} : vector<8x16xbf16>, vector<8x16xbf16>, vector<8x8xf32> -> vector<8x8xf32>
    %26 = vector.broadcast %17 : vector<1x8xf32> to vector<8x8xf32>
    %27 = arith.addf %25, %26 : vector<8x8xf32>
    %c0_12 = arith.constant 0 : index
    %c0_13 = arith.constant 0 : index
    %28 = vector.load %arg7[%c0_12, %c0_13] : memref<8x2xf32, #tpu.memory_space<vmem>>, vector<8x1xf32>
    %cst_14 = arith.constant dense<0xFF800000> : vector<8xf32>
    %29 = vector.multi_reduction <maximumf>, %27, %cst_14 [1] : vector<8x8xf32> to vector<8xf32>
    %30 = vector.shape_cast %29 : vector<8xf32> to vector<8x1xf32>
    %31 = arith.maximumf %28, %30 : vector<8x1xf32>
    %32 = arith.subf %28, %31 : vector<8x1xf32>
    %33 = math.exp %32 : vector<8x1xf32>
    %34 = vector.broadcast %31 : vector<8x1xf32> to vector<8x8xf32>
    %35 = arith.subf %27, %34 : vector<8x8xf32>
    %36 = math.exp %35 : vector<8x8xf32>
    %c0_15 = arith.constant 0 : index
    %c0_16 = arith.constant 0 : index
    %37 = vector.load %arg8[%c0_15, %c0_16] : memref<8x2xf32, #tpu.memory_space<vmem>>, vector<8x1xf32>
    %38 = arith.mulf %33, %37 : vector<8x1xf32>
    %cst_17 = arith.constant dense<0.000000e+00> : vector<8xf32>
    %39 = vector.multi_reduction <add>, %36, %cst_17 [1] : vector<8x8xf32> to vector<8xf32>
    %40 = vector.shape_cast %39 : vector<8xf32> to vector<8x1xf32>
    %41 = arith.addf %38, %40 : vector<8x1xf32>
    %c0_18 = arith.constant 0 : index
    %c0_19 = arith.constant 0 : index
    %42 = vector.load %arg8[%c0_18, %c0_19] : memref<8x2xf32, #tpu.memory_space<vmem>>, vector<8x1xf32>
    tpu.vector_store %arg8[%c0_18, %c0_19], %41 {strides = array<i32>} : memref<8x2xf32, #tpu.memory_space<vmem>>, vector<8x1xf32>,
    %c0_20 = arith.constant 0 : index
    %c0_21 = arith.constant 0 : index
    %c0_22 = arith.constant 0 : index
    %43 = vector.load %arg9[%c0_20, %c0_21, %c0_22] : memref<2x8x16xf32, #tpu.memory_space<vmem>>, vector<1x8x16xf32>
    %44 = vector.shape_cast %43 : vector<1x8x16xf32> to vector<8x16xf32>
    %45 = vector.broadcast %33 : vector<8x1xf32> to vector<8x16xf32>
    %46 = arith.mulf %45, %44 : vector<8x16xf32>
    %47 = arith.truncf %36 : vector<8x8xf32> to vector<8x8xbf16>
    %cst_23 = arith.constant dense<0.000000e+00> : vector<8x16xf32>
    %48 = tpu.matmul %47, %24, %cst_23 {dimension_numbers = #tpu.dot_dimension_numbers<[1], [0], [0], [1], [0, 0, 1, 1], [], []>} : vector<8x8xbf16>, vector<8x16xbf16>, vector<8x16xf32> -> vector<8x16xf32>
    %49 = arith.addf %46, %48 : vector<8x16xf32>
    %c0_24 = arith.constant 0 : index
    %c0_25 = arith.constant 0 : index
    %c0_26 = arith.constant 0 : index
    %50 = vector.load %arg9[%c0_24, %c0_25, %c0_26] : memref<2x8x16xf32, #tpu.memory_space<vmem>>, vector<1x8x16xf32>
    %51 = vector.shape_cast %50 : vector<1x8x16xf32> to vector<8x16xf32>
    %52 = vector.shape_cast %49 : vector<8x16xf32> to vector<1x8x16xf32>
    tpu.vector_store %arg9[%c0_24, %c0_25, %c0_26], %52 {strides = array<i32>} : memref<2x8x16xf32, #tpu.memory_space<vmem>>, vector<1x8x16xf32>,
    %c0_27 = arith.constant 0 : index
    %c0_28 = arith.constant 0 : index
    %53 = vector.load %arg7[%c0_27, %c0_28] : memref<8x2xf32, #tpu.memory_space<vmem>>, vector<8x1xf32>
    tpu.vector_store %arg7[%c0_27, %c0_28], %31 {strides = array<i32>} : memref<8x2xf32, #tpu.memory_space<vmem>>, vector<8x1xf32>,
    %54 = vector.extract_strided_slice %4 {offsets = [0, 16], sizes = [8, 16], strides = [1, 1]} : vector<8x32xbf16> to vector<8x16xbf16>
    %55 = arith.extf %54 : vector<8x16xbf16> to vector<8x16xf32>
    %cst_29 = arith.constant 2.500000e-01 : f32
    %56 = vector.broadcast %cst_29 : f32 to vector<8x16xf32>
    %57 = arith.mulf %55, %56 : vector<8x16xf32>
    %58 = arith.truncf %57 : vector<8x16xf32> to vector<8x16xbf16>
    %59 = vector.extract_strided_slice %6 {offsets = [0, 16], sizes = [8, 16], strides = [1, 1]} : vector<8x32xbf16> to vector<8x16xbf16>
    %60 = vector.extract_strided_slice %8 {offsets = [0, 16], sizes = [8, 16], strides = [1, 1]} : vector<8x32xbf16> to vector<8x16xbf16>
    %cst_30 = arith.constant dense<0.000000e+00> : vector<8x8xf32>
    %61 = tpu.matmul %58, %59, %cst_30 {dimension_numbers = #tpu.dot_dimension_numbers<[1], [1], [0], [0], [0, 0, 1, 0], [], []>} : vector<8x16xbf16>, vector<8x16xbf16>, vector<8x8xf32> -> vector<8x8xf32>
    %62 = vector.broadcast %17 : vector<1x8xf32> to vector<8x8xf32>
    %63 = arith.addf %61, %62 : vector<8x8xf32>
    %c0_31 = arith.constant 0 : index
    %c1 = arith.constant 1 : index
    %64 = vector.load %arg7[%c0_31, %c1] : memref<8x2xf32, #tpu.memory_space<vmem>>, vector<8x1xf32>
    %cst_32 = arith.constant dense<0xFF800000> : vector<8xf32>
    %65 = vector.multi_reduction <maximumf>, %63, %cst_32 [1] : vector<8x8xf32> to vector<8xf32>
    %66 = vector.shape_cast %65 : vector<8xf32> to vector<8x1xf32>
    %67 = arith.maximumf %64, %66 : vector<8x1xf32>
    %68 = arith.subf %64, %67 : vector<8x1xf32>
    %69 = math.exp %68 : vector<8x1xf32>
    %70 = vector.broadcast %67 : vector<8x1xf32> to vector<8x8xf32>
    %71 = arith.subf %63, %70 : vector<8x8xf32>
    %72 = math.exp %71 : vector<8x8xf32>
    %c0_33 = arith.constant 0 : index
    %c1_34 = arith.constant 1 : index
    %73 = vector.load %arg8[%c0_33, %c1_34] : memref<8x2xf32, #tpu.memory_space<vmem>>, vector<8x1xf32>
    %74 = arith.mulf %69, %73 : vector<8x1xf32>
    %cst_35 = arith.constant dense<0.000000e+00> : vector<8xf32>
    %75 = vector.multi_reduction <add>, %72, %cst_35 [1] : vector<8x8xf32> to vector<8xf32>
    %76 = vector.shape_cast %75 : vector<8xf32> to vector<8x1xf32>
    %77 = arith.addf %74, %76 : vector<8x1xf32>
    %c0_36 = arith.constant 0 : index
    %c1_37 = arith.constant 1 : index
    %78 = vector.load %arg8[%c0_36, %c1_37] : memref<8x2xf32, #tpu.memory_space<vmem>>, vector<8x1xf32>
    tpu.vector_store %arg8[%c0_36, %c1_37], %77 {strides = array<i32>} : memref<8x2xf32, #tpu.memory_space<vmem>>, vector<8x1xf32>,
    %c1_38 = arith.constant 1 : index
    %c0_39 = arith.constant 0 : index
    %c0_40 = arith.constant 0 : index
    %79 = vector.load %arg9[%c1_38, %c0_39, %c0_40] : memref<2x8x16xf32, #tpu.memory_space<vmem>>, vector<1x8x16xf32>
    %80 = vector.shape_cast %79 : vector<1x8x16xf32> to vector<8x16xf32>
    %81 = vector.broadcast %69 : vector<8x1xf32> to vector<8x16xf32>
    %82 = arith.mulf %81, %80 : vector<8x16xf32>
    %83 = arith.truncf %72 : vector<8x8xf32> to vector<8x8xbf16>
    %cst_41 = arith.constant dense<0.000000e+00> : vector<8x16xf32>
    %84 = tpu.matmul %83, %60, %cst_41 {dimension_numbers = #tpu.dot_dimension_numbers<[1], [0], [0], [1], [0, 0, 1, 1], [], []>} : vector<8x8xbf16>, vector<8x16xbf16>, vector<8x16xf32> -> vector<8x16xf32>
    %85 = arith.addf %82, %84 : vector<8x16xf32>
    %c1_42 = arith.constant 1 : index
    %c0_43 = arith.constant 0 : index
    %c0_44 = arith.constant 0 : index
    %86 = vector.load %arg9[%c1_42, %c0_43, %c0_44] : memref<2x8x16xf32, #tpu.memory_space<vmem>>, vector<1x8x16xf32>
    %87 = vector.shape_cast %86 : vector<1x8x16xf32> to vector<8x16xf32>
    %88 = vector.shape_cast %85 : vector<8x16xf32> to vector<1x8x16xf32>
    tpu.vector_store %arg9[%c1_42, %c0_43, %c0_44], %88 {strides = array<i32>} : memref<2x8x16xf32, #tpu.memory_space<vmem>>, vector<1x8x16xf32>,
    %c0_45 = arith.constant 0 : index
    %c1_46 = arith.constant 1 : index
    %89 = vector.load %arg7[%c0_45, %c1_46] : memref<8x2xf32, #tpu.memory_space<vmem>>, vector<8x1xf32>
    tpu.vector_store %arg7[%c0_45, %c1_46], %67 {strides = array<i32>} : memref<8x2xf32, #tpu.memory_space<vmem>>, vector<8x1xf32>,
    %c0_i32_47 = arith.constant 0 : i32
    %90 = arith.cmpi eq, %arg2, %c0_i32_47 : i32
    %91 = arith.extui %90 : i1 to i32
    %c0_i32_48 = arith.constant 0 : i32
    %92 = arith.cmpi ne, %91, %c0_i32_48 : i32
    scf.if %92 {
      %c0_49 = arith.constant 0 : index
      %c0_50 = arith.constant 0 : index
      %c0_51 = arith.constant 0 : index
      %93 = vector.load %arg9[%c0_49, %c0_50, %c0_51] : memref<2x8x16xf32, #tpu.memory_space<vmem>>, vector<1x8x16xf32>
      %94 = vector.shape_cast %93 : vector<1x8x16xf32> to vector<8x16xf32>
      %c0_52 = arith.constant 0 : index
      %c0_53 = arith.constant 0 : index
      %95 = vector.load %arg8[%c0_52, %c0_53] : memref<8x2xf32, #tpu.memory_space<vmem>>, vector<8x1xf32>
      %96 = tpu.reciprocal %95 {approx = true} : vector<8x1xf32> -> vector<8x1xf32>
      %97 = vector.broadcast %96 : vector<8x1xf32> to vector<8x16xf32>
      %98 = arith.mulf %94, %97 : vector<8x16xf32>
      %c1_54 = arith.constant 1 : index
      %c0_55 = arith.constant 0 : index
      %c0_56 = arith.constant 0 : index
      %99 = vector.load %arg9[%c1_54, %c0_55, %c0_56] : memref<2x8x16xf32, #tpu.memory_space<vmem>>, vector<1x8x16xf32>
      %100 = vector.shape_cast %99 : vector<1x8x16xf32> to vector<8x16xf32>
      %c0_57 = arith.constant 0 : index
      %c1_58 = arith.constant 1 : index
      %101 = vector.load %arg8[%c0_57, %c1_58] : memref<8x2xf32, #tpu.memory_space<vmem>>, vector<8x1xf32>
      %102 = tpu.reciprocal %101 {approx = true} : vector<8x1xf32> -> vector<8x1xf32>
      %103 = vector.broadcast %102 : vector<8x1xf32> to vector<8x16xf32>
      %104 = arith.mulf %100, %103 : vector<8x16xf32>
      %105 = tpu.concatenate %98, %104 in 1 : vector<8x16xf32>, vector<8x16xf32> -> vector<8x32xf32>
      %106 = arith.truncf %105 : vector<8x32xf32> to vector<8x32xbf16>
      %c0_59 = arith.constant 0 : index
      %c0_60 = arith.constant 0 : index
      %c0_61 = arith.constant 0 : index
      %107 = vector.load %arg6[%c0_59, %c0_60, %c0_61] : memref<1x8x32xbf16, #tpu.memory_space<vmem>>, vector<1x8x32xbf16>
      %108 = vector.shape_cast %107 : vector<1x8x32xbf16> to vector<8x32xbf16>
      %109 = vector.shape_cast %106 : vector<8x32xbf16> to vector<1x8x32xbf16>
      tpu.vector_store %arg6[%c0_59, %c0_60, %c0_61], %109 {strides = array<i32>} : memref<1x8x32xbf16, #tpu.memory_space<vmem>>, vector<1x8x32xbf16>,
    } else {
    }
    return
  }
  func.func @transform_0(%arg0: i32, %arg1: i32, %arg2: i32) -> (i32, i32, i32) {
    %c0_i32 = arith.constant 0 : i32
    %c0_i32_0 = arith.constant 0 : i32
    return %arg0, %arg1, %c0_i32 : i32, i32, i32
  }
  func.func @transform_1(%arg0: i32, %arg1: i32, %arg2: i32) -> (i32, i32, i32) {
    %c0_i32 = arith.constant 0 : i32
    %c0_i32_0 = arith.constant 0 : i32
    return %arg0, %arg2, %c0_i32 : i32, i32, i32
  }
  func.func @transform_2(%arg0: i32, %arg1: i32, %arg2: i32) -> (i32, i32, i32) {
    %c0_i32 = arith.constant 0 : i32
    %c0_i32_0 = arith.constant 0 : i32
    return %arg0, %arg2, %c0_i32 : i32, i32, i32
  }
  func.func @transform_3(%arg0: i32, %arg1: i32, %arg2: i32) -> (i32, i32, i32) {
    %c0_i32 = arith.constant 0 : i32
    %c0_i32_0 = arith.constant 0 : i32
    return %arg0, %arg1, %c0_i32 : i32, i32, i32
  }
}

module attributes {stable_mosaic.version = 11 : i64} {
  func.func @_matmul_kernel(%arg0: i32, %arg1: i32, %arg2: i32, %arg3: memref<8x128xbf16, #tpu.memory_space<vmem>>, %arg4: memref<128x128xbf16, #tpu.memory_space<vmem>>, %arg5: memref<1x128xf32, #tpu.memory_space<vmem>>, %arg6: memref<1x128xf32, #tpu.memory_space<vmem>>, %arg7: memref<1x128xf32, #tpu.memory_space<vmem>>, %arg8: memref<8x128xbf16, #tpu.memory_space<vmem>>) attributes {dimension_semantics = [#tpu.dimension_semantics<parallel>, #tpu.dimension_semantics<parallel>, #tpu.dimension_semantics<arbitrary>], iteration_bounds = array<i64: 1, 1, 1>, scalar_prefetch = 0 : i64, scratch_operands = 0 : i64, tpu.core_type = #tpu.core_type<tc>, window_params = [{transform_indices = @transform_0, window_bounds = array<i64: 8, 128>}, {transform_indices = @transform_1, window_bounds = array<i64: 128, 128>}, {transform_indices = @transform_2, window_bounds = array<i64: 1, 128>}, {transform_indices = @transform_3, window_bounds = array<i64: 1, 128>}, {transform_indices = @transform_4, window_bounds = array<i64: 1, 128>}, {transform_indices = @transform_5, window_bounds = array<i64: 8, 128>}]} {
    %c0 = arith.constant 0 : index
    %c0_0 = arith.constant 0 : index
    %0 = vector.load %arg3[%c0, %c0_0] : memref<8x128xbf16, #tpu.memory_space<vmem>>, vector<8x128xbf16>
    %1 = arith.extf %0 : vector<8x128xbf16> to vector<8x128xf32>
    %cst = arith.constant dense<0.000000e+00> : vector<8xf32>
    %2 = vector.multi_reduction <add>, %1, %cst [1] : vector<8x128xf32> to vector<8xf32>
    %3 = vector.shape_cast %2 : vector<8xf32> to vector<8x1xf32>
    %cst_1 = arith.constant 3.125000e-02 : f32
    %4 = vector.broadcast %cst_1 : f32 to vector<8x1xf32>
    %5 = arith.mulf %3, %4 : vector<8x1xf32>
    %6 = vector.broadcast %5 : vector<8x1xf32> to vector<8x128xf32>
    %7 = arith.subf %1, %6 : vector<8x128xf32>
    %8 = tpu.iota {dimensions = array<i32: 1>} : vector<8x128xi32>
    %c32_i32 = arith.constant 32 : i32
    %9 = vector.broadcast %c32_i32 : i32 to vector<8x128xi32>
    %10 = arith.cmpi slt, %8, %9 : vector<8x128xi32>
    %cst_2 = arith.constant 0.000000e+00 : f32
    %11 = vector.broadcast %cst_2 : f32 to vector<8x128xf32>
    %12 = arith.select %10, %7, %11 : vector<8x128xi1>, vector<8x128xf32>
    %13 = arith.mulf %12, %12 : vector<8x128xf32>
    %cst_3 = arith.constant dense<0.000000e+00> : vector<8xf32>
    %14 = vector.multi_reduction <add>, %13, %cst_3 [1] : vector<8x128xf32> to vector<8xf32>
    %15 = vector.shape_cast %14 : vector<8xf32> to vector<8x1xf32>
    %cst_4 = arith.constant 3.125000e-02 : f32
    %16 = vector.broadcast %cst_4 : f32 to vector<8x1xf32>
    %17 = arith.mulf %15, %16 : vector<8x1xf32>
    %cst_5 = arith.constant 9.99999997E-7 : f32
    %18 = vector.broadcast %cst_5 : f32 to vector<8x1xf32>
    %19 = arith.addf %17, %18 : vector<8x1xf32>
    %20 = math.rsqrt %19 : vector<8x1xf32>
    %21 = vector.broadcast %20 : vector<8x1xf32> to vector<8x128xf32>
    %22 = arith.mulf %12, %21 : vector<8x128xf32>
    %c0_6 = arith.constant 0 : index
    %c0_7 = arith.constant 0 : index
    %23 = vector.load %arg6[%c0_6, %c0_7] : memref<1x128xf32, #tpu.memory_space<vmem>>, vector<1x128xf32>
    %24 = vector.broadcast %23 : vector<1x128xf32> to vector<8x128xf32>
    %25 = arith.mulf %22, %24 : vector<8x128xf32>
    %c0_8 = arith.constant 0 : index
    %c0_9 = arith.constant 0 : index
    %26 = vector.load %arg7[%c0_8, %c0_9] : memref<1x128xf32, #tpu.memory_space<vmem>>, vector<1x128xf32>
    %27 = vector.broadcast %26 : vector<1x128xf32> to vector<8x128xf32>
    %28 = arith.addf %25, %27 : vector<8x128xf32>
    %29 = arith.truncf %28 : vector<8x128xf32> to vector<8x128xbf16>
    %c0_10 = arith.constant 0 : index
    %c0_11 = arith.constant 0 : index
    %30 = vector.load %arg4[%c0_10, %c0_11] : memref<128x128xbf16, #tpu.memory_space<vmem>>, vector<128x128xbf16>
    %cst_12 = arith.constant dense<0.000000e+00> : vector<8x128xf32>
    %31 = tpu.matmul %29, %30, %cst_12 {dimension_numbers = #tpu.dot_dimension_numbers<[1], [0], [0], [1], [0, 0, 1, 1], [], []>} : vector<8x128xbf16>, vector<128x128xbf16>, vector<8x128xf32> -> vector<8x128xf32>
    %c0_13 = arith.constant 0 : index
    %c0_14 = arith.constant 0 : index
    %32 = vector.load %arg5[%c0_13, %c0_14] : memref<1x128xf32, #tpu.memory_space<vmem>>, vector<1x128xf32>
    %33 = vector.broadcast %32 : vector<1x128xf32> to vector<8x128xf32>
    %34 = arith.addf %31, %33 : vector<8x128xf32>
    %cst_15 = arith.constant 5.000000e-01 : f32
    %35 = vector.broadcast %cst_15 : f32 to vector<8x128xf32>
    %36 = arith.mulf %35, %34 : vector<8x128xf32>
    %cst_16 = arith.constant 4.471500e-02 : f32
    %37 = vector.broadcast %cst_16 : f32 to vector<8x128xf32>
    %38 = arith.mulf %37, %34 : vector<8x128xf32>
    %39 = arith.mulf %38, %34 : vector<8x128xf32>
    %40 = arith.mulf %39, %34 : vector<8x128xf32>
    %41 = arith.addf %34, %40 : vector<8x128xf32>
    %cst_17 = arith.constant 0.797884583 : f32
    %42 = vector.broadcast %cst_17 : f32 to vector<8x128xf32>
    %43 = arith.mulf %42, %41 : vector<8x128xf32>
    %44 = math.tanh %43 : vector<8x128xf32>
    %cst_18 = arith.constant 1.000000e+00 : f32
    %45 = vector.broadcast %cst_18 : f32 to vector<8x128xf32>
    %46 = arith.addf %45, %44 : vector<8x128xf32>
    %47 = arith.mulf %36, %46 : vector<8x128xf32>
    %48 = arith.truncf %47 : vector<8x128xf32> to vector<8x128xbf16>
    %c0_19 = arith.constant 0 : index
    %c0_20 = arith.constant 0 : index
    %49 = vector.load %arg8[%c0_19, %c0_20] : memref<8x128xbf16, #tpu.memory_space<vmem>>, vector<8x128xbf16>
    tpu.vector_store %arg8[%c0_19, %c0_20], %48 {strides = array<i32>} : memref<8x128xbf16, #tpu.memory_space<vmem>>, vector<8x128xbf16>,
    return
  }
  func.func @transform_0(%arg0: i32, %arg1: i32, %arg2: i32) -> (i32, i32) {
    %c0_i32 = arith.constant 0 : i32
    return %arg0, %arg2 : i32, i32
  }
  func.func @transform_1(%arg0: i32, %arg1: i32, %arg2: i32) -> (i32, i32) {
    %c0_i32 = arith.constant 0 : i32
    return %arg2, %arg1 : i32, i32
  }
  func.func @transform_2(%arg0: i32, %arg1: i32, %arg2: i32) -> (i32, i32) {
    %c0_i32 = arith.constant 0 : i32
    %c0_i32_0 = arith.constant 0 : i32
    return %c0_i32, %arg1 : i32, i32
  }
  func.func @transform_3(%arg0: i32, %arg1: i32, %arg2: i32) -> (i32, i32) {
    %c0_i32 = arith.constant 0 : i32
    %c0_i32_0 = arith.constant 0 : i32
    return %c0_i32, %arg2 : i32, i32
  }
  func.func @transform_4(%arg0: i32, %arg1: i32, %arg2: i32) -> (i32, i32) {
    %c0_i32 = arith.constant 0 : i32
    %c0_i32_0 = arith.constant 0 : i32
    return %c0_i32, %arg2 : i32, i32
  }
  func.func @transform_5(%arg0: i32, %arg1: i32, %arg2: i32) -> (i32, i32) {
    %c0_i32 = arith.constant 0 : i32
    return %arg0, %arg1 : i32, i32
  }
}

module attributes {stable_mosaic.version = 11 : i64} {
  func.func @_matmul_kernel(%arg0: i32, %arg1: i32, %arg2: i32, %arg3: memref<8x128xbf16, #tpu.memory_space<vmem>>, %arg4: memref<128x128xbf16, #tpu.memory_space<vmem>>, %arg5: memref<1x128xf32, #tpu.memory_space<vmem>>, %arg6: memref<1x128xf32, #tpu.memory_space<vmem>>, %arg7: memref<8x128xbf16, #tpu.memory_space<vmem>>) attributes {dimension_semantics = [#tpu.dimension_semantics<parallel>, #tpu.dimension_semantics<parallel>, #tpu.dimension_semantics<arbitrary>], iteration_bounds = array<i64: 1, 1, 1>, scalar_prefetch = 0 : i64, scratch_operands = 0 : i64, tpu.core_type = #tpu.core_type<tc>, window_params = [{transform_indices = @transform_0, window_bounds = array<i64: 8, 128>}, {transform_indices = @transform_1, window_bounds = array<i64: 128, 128>}, {transform_indices = @transform_2, window_bounds = array<i64: 1, 128>}, {transform_indices = @transform_3, window_bounds = array<i64: 1, 128>}, {transform_indices = @transform_4, window_bounds = array<i64: 8, 128>}]} {
    %c0 = arith.constant 0 : index
    %c0_0 = arith.constant 0 : index
    %0 = vector.load %arg3[%c0, %c0_0] : memref<8x128xbf16, #tpu.memory_space<vmem>>, vector<8x128xbf16>
    %c0_1 = arith.constant 0 : index
    %c0_2 = arith.constant 0 : index
    %1 = vector.load %arg4[%c0_1, %c0_2] : memref<128x128xbf16, #tpu.memory_space<vmem>>, vector<128x128xbf16>
    %cst = arith.constant dense<0.000000e+00> : vector<8x128xf32>
    %2 = tpu.matmul %0, %1, %cst {dimension_numbers = #tpu.dot_dimension_numbers<[1], [0], [0], [1], [0, 0, 1, 1], [], []>} : vector<8x128xbf16>, vector<128x128xbf16>, vector<8x128xf32> -> vector<8x128xf32>
    %cst_3 = arith.constant dense<0.000000e+00> : vector<8xf32>
    %3 = vector.multi_reduction <add>, %2, %cst_3 [1] : vector<8x128xf32> to vector<8xf32>
    %4 = vector.shape_cast %3 : vector<8xf32> to vector<8x1xf32>
    %cst_4 = arith.constant 3.125000e-02 : f32
    %5 = vector.broadcast %cst_4 : f32 to vector<8x1xf32>
    %6 = arith.mulf %4, %5 : vector<8x1xf32>
    %7 = vector.broadcast %6 : vector<8x1xf32> to vector<8x128xf32>
    %8 = arith.subf %2, %7 : vector<8x128xf32>
    %9 = tpu.iota {dimensions = array<i32: 1>} : vector<8x128xi32>
    %c32_i32 = arith.constant 32 : i32
    %10 = vector.broadcast %c32_i32 : i32 to vector<8x128xi32>
    %11 = arith.cmpi slt, %9, %10 : vector<8x128xi32>
    %cst_5 = arith.constant 0.000000e+00 : f32
    %12 = vector.broadcast %cst_5 : f32 to vector<8x128xf32>
    %13 = arith.select %11, %8, %12 : vector<8x128xi1>, vector<8x128xf32>
    %14 = arith.mulf %13, %13 : vector<8x128xf32>
    %cst_6 = arith.constant dense<0.000000e+00> : vector<8xf32>
    %15 = vector.multi_reduction <add>, %14, %cst_6 [1] : vector<8x128xf32> to vector<8xf32>
    %16 = vector.shape_cast %15 : vector<8xf32> to vector<8x1xf32>
    %cst_7 = arith.constant 3.125000e-02 : f32
    %17 = vector.broadcast %cst_7 : f32 to vector<8x1xf32>
    %18 = arith.mulf %16, %17 : vector<8x1xf32>
    %cst_8 = arith.constant 9.99999997E-7 : f32
    %19 = vector.broadcast %cst_8 : f32 to vector<8x1xf32>
    %20 = arith.addf %18, %19 : vector<8x1xf32>
    %21 = math.rsqrt %20 : vector<8x1xf32>
    %22 = vector.broadcast %21 : vector<8x1xf32> to vector<8x128xf32>
    %23 = arith.mulf %13, %22 : vector<8x128xf32>
    %c0_9 = arith.constant 0 : index
    %c0_10 = arith.constant 0 : index
    %24 = vector.load %arg5[%c0_9, %c0_10] : memref<1x128xf32, #tpu.memory_space<vmem>>, vector<1x128xf32>
    %25 = vector.broadcast %24 : vector<1x128xf32> to vector<8x128xf32>
    %26 = arith.mulf %23, %25 : vector<8x128xf32>
    %c0_11 = arith.constant 0 : index
    %c0_12 = arith.constant 0 : index
    %27 = vector.load %arg6[%c0_11, %c0_12] : memref<1x128xf32, #tpu.memory_space<vmem>>, vector<1x128xf32>
    %28 = vector.broadcast %27 : vector<1x128xf32> to vector<8x128xf32>
    %29 = arith.addf %26, %28 : vector<8x128xf32>
    %30 = arith.truncf %29 : vector<8x128xf32> to vector<8x128xbf16>
    %c0_13 = arith.constant 0 : index
    %c0_14 = arith.constant 0 : index
    %31 = vector.load %arg7[%c0_13, %c0_14] : memref<8x128xbf16, #tpu.memory_space<vmem>>, vector<8x128xbf16>
    tpu.vector_store %arg7[%c0_13, %c0_14], %30 {strides = array<i32>} : memref<8x128xbf16, #tpu.memory_space<vmem>>, vector<8x128xbf16>,
    return
  }
  func.func @transform_0(%arg0: i32, %arg1: i32, %arg2: i32) -> (i32, i32) {
    %c0_i32 = arith.constant 0 : i32
    return %arg0, %arg2 : i32, i32
  }
  func.func @transform_1(%arg0: i32, %arg1: i32, %arg2: i32) -> (i32, i32) {
    %c0_i32 = arith.constant 0 : i32
    return %arg2, %arg1 : i32, i32
  }
  func.func @transform_2(%arg0: i32, %arg1: i32, %arg2: i32) -> (i32, i32) {
    %c0_i32 = arith.constant 0 : i32
    %c0_i32_0 = arith.constant 0 : i32
    return %c0_i32, %arg1 : i32, i32
  }
  func.func @transform_3(%arg0: i32, %arg1: i32, %arg2: i32) -> (i32, i32) {
    %c0_i32 = arith.constant 0 : i32
    %c0_i32_0 = arith.constant 0 : i32
    return %c0_i32, %arg1 : i32, i32
  }
  func.func @transform_4(%arg0: i32, %arg1: i32, %arg2: i32) -> (i32, i32) {
    %c0_i32 = arith.constant 0 : i32
    return %arg0, %arg1 : i32, i32
  }
}

module attributes {stable_mosaic.version = 11 : i64} {
  func.func @_matmul_kernel(%arg0: i32, %arg1: i32, %arg2: i32, %arg3: memref<8x384xbf16, #tpu.memory_space<vmem>>, %arg4: memref<384x128xbf16, #tpu.memory_space<vmem>>, %arg5: memref<1x128xf32, #tpu.memory_space<vmem>>, %arg6: memref<1x128xf32, #tpu.memory_space<vmem>>, %arg7: memref<8x128xf32, #tpu.memory_space<vmem>>) attributes {dimension_semantics = [#tpu.dimension_semantics<parallel>, #tpu.dimension_semantics<parallel>, #tpu.dimension_semantics<arbitrary>], iteration_bounds = array<i64: 1, 1, 1>, scalar_prefetch = 0 : i64, scratch_operands = 0 : i64, tpu.core_type = #tpu.core_type<tc>, window_params = [{transform_indices = @transform_0, window_bounds = array<i64: 8, 384>}, {transform_indices = @transform_1, window_bounds = array<i64: 384, 128>}, {transform_indices = @transform_2, window_bounds = array<i64: 1, 128>}, {transform_indices = @transform_3, window_bounds = array<i64: 1, 128>}, {transform_indices = @transform_4, window_bounds = array<i64: 8, 128>}]} {
    %c0 = arith.constant 0 : index
    %c0_0 = arith.constant 0 : index
    %0 = vector.load %arg3[%c0, %c0_0] : memref<8x384xbf16, #tpu.memory_space<vmem>>, vector<8x384xbf16>
    %c0_1 = arith.constant 0 : index
    %c0_2 = arith.constant 0 : index
    %1 = vector.load %arg4[%c0_1, %c0_2] : memref<384x128xbf16, #tpu.memory_space<vmem>>, vector<384x128xbf16>
    %cst = arith.constant dense<0.000000e+00> : vector<8x128xf32>
    %2 = tpu.matmul %0, %1, %cst {dimension_numbers = #tpu.dot_dimension_numbers<[1], [0], [0], [1], [0, 0, 1, 1], [], []>} : vector<8x384xbf16>, vector<384x128xbf16>, vector<8x128xf32> -> vector<8x128xf32>
    %cst_3 = arith.constant dense<0.000000e+00> : vector<8xf32>
    %3 = vector.multi_reduction <add>, %2, %cst_3 [1] : vector<8x128xf32> to vector<8xf32>
    %4 = vector.shape_cast %3 : vector<8xf32> to vector<8x1xf32>
    %cst_4 = arith.constant 3.125000e-02 : f32
    %5 = vector.broadcast %cst_4 : f32 to vector<8x1xf32>
    %6 = arith.mulf %4, %5 : vector<8x1xf32>
    %7 = vector.broadcast %6 : vector<8x1xf32> to vector<8x128xf32>
    %8 = arith.subf %2, %7 : vector<8x128xf32>
    %9 = tpu.iota {dimensions = array<i32: 1>} : vector<8x128xi32>
    %c32_i32 = arith.constant 32 : i32
    %10 = vector.broadcast %c32_i32 : i32 to vector<8x128xi32>
    %11 = arith.cmpi slt, %9, %10 : vector<8x128xi32>
    %cst_5 = arith.constant 0.000000e+00 : f32
    %12 = vector.broadcast %cst_5 : f32 to vector<8x128xf32>
    %13 = arith.select %11, %8, %12 : vector<8x128xi1>, vector<8x128xf32>
    %14 = arith.mulf %13, %13 : vector<8x128xf32>
    %cst_6 = arith.constant dense<0.000000e+00> : vector<8xf32>
    %15 = vector.multi_reduction <add>, %14, %cst_6 [1] : vector<8x128xf32> to vector<8xf32>
    %16 = vector.shape_cast %15 : vector<8xf32> to vector<8x1xf32>
    %cst_7 = arith.constant 3.125000e-02 : f32
    %17 = vector.broadcast %cst_7 : f32 to vector<8x1xf32>
    %18 = arith.mulf %16, %17 : vector<8x1xf32>
    %cst_8 = arith.constant 9.99999997E-7 : f32
    %19 = vector.broadcast %cst_8 : f32 to vector<8x1xf32>
    %20 = arith.addf %18, %19 : vector<8x1xf32>
    %21 = math.rsqrt %20 : vector<8x1xf32>
    %22 = vector.broadcast %21 : vector<8x1xf32> to vector<8x128xf32>
    %23 = arith.mulf %13, %22 : vector<8x128xf32>
    %c0_9 = arith.constant 0 : index
    %c0_10 = arith.constant 0 : index
    %24 = vector.load %arg5[%c0_9, %c0_10] : memref<1x128xf32, #tpu.memory_space<vmem>>, vector<1x128xf32>
    %25 = vector.broadcast %24 : vector<1x128xf32> to vector<8x128xf32>
    %26 = arith.mulf %23, %25 : vector<8x128xf32>
    %c0_11 = arith.constant 0 : index
    %c0_12 = arith.constant 0 : index
    %27 = vector.load %arg6[%c0_11, %c0_12] : memref<1x128xf32, #tpu.memory_space<vmem>>, vector<1x128xf32>
    %28 = vector.broadcast %27 : vector<1x128xf32> to vector<8x128xf32>
    %29 = arith.addf %26, %28 : vector<8x128xf32>
    %c0_13 = arith.constant 0 : index
    %c0_14 = arith.constant 0 : index
    %30 = vector.load %arg7[%c0_13, %c0_14] : memref<8x128xf32, #tpu.memory_space<vmem>>, vector<8x128xf32>
    tpu.vector_store %arg7[%c0_13, %c0_14], %29 {strides = array<i32>} : memref<8x128xf32, #tpu.memory_space<vmem>>, vector<8x128xf32>,
    return
  }
  func.func @transform_0(%arg0: i32, %arg1: i32, %arg2: i32) -> (i32, i32) {
    %c0_i32 = arith.constant 0 : i32
    return %arg0, %arg2 : i32, i32
  }
  func.func @transform_1(%arg0: i32, %arg1: i32, %arg2: i32) -> (i32, i32) {
    %c0_i32 = arith.constant 0 : i32
    return %arg2, %arg1 : i32, i32
  }
  func.func @transform_2(%arg0: i32, %arg1: i32, %arg2: i32) -> (i32, i32) {
    %c0_i32 = arith.constant 0 : i32
    %c0_i32_0 = arith.constant 0 : i32
    return %c0_i32, %arg1 : i32, i32
  }
  func.func @transform_3(%arg0: i32, %arg1: i32, %arg2: i32) -> (i32, i32) {
    %c0_i32 = arith.constant 0 : i32
    %c0_i32_0 = arith.constant 0 : i32
    return %c0_i32, %arg1 : i32, i32
  }
  func.func @transform_4(%arg0: i32, %arg1: i32, %arg2: i32) -> (i32, i32) {
    %c0_i32 = arith.constant 0 : i32
    return %arg0, %arg1 : i32, i32
  }
}

</mosaic_0001>

<bundles_post_ra>
// kernel: _lambda_.19
= control target key start
LH: loop header
LB: loop body
LE: loop exit
PB: predicated region body
PF: predicated region fallthrough
CT: control target
= control target key end

     0   :  { %v224_v2 = vmov 0.0   ;;  %v27_v5 = vlaneseq  ;;  %vm225_vm1 = vmmov 0   ;;  %s295_s0 = inlined_call_operand.vmem [shape: bf16[8,128], index: 0, kind: input, shape index: {}]   ;;  %s296_s1 = inlined_call_operand.vmem [shape: bf16[128,128], index: 1, kind: input, shape index: {}]   ;;  %s297_s3 = inlined_call_operand.vmem [shape: f32[1,128], index: 3, kind: input, shape index: {}]   ;;  %s298_s4 = inlined_call_operand.vmem [shape: f32[1,128], index: 4, kind: input, shape index: {}, may-alias: {2,4}]   ;;  %s299_s2 = inlined_call_operand.vmem [shape: f32[1,128], index: 2, kind: input, shape index: {}, may-alias: {2,4}]   ;;  %s300_s5 = inlined_call_operand.vmem [shape: bf16[8,128], index: 5, kind: output, shape index: {}]  }
   0x1   :  { %v21_v0 = vld [vmem:[%s295_s0] sm:$0xf]  ;;  %192 = vmatprep.subr.bf16.mxu0 %v224_v2  ;;  %v215_v4 = vld [vmem:[%s296_s1 + $0x8] sm:$0xff]   ;;  %v216_v12 = vld [vmem:[%s296_s1 + $0x10] sm:$0xff]   ;;  %208 = vmatprep.mubr.msk.bf16.mxu0 %vm225_vm1, %v224_v2 }
   0x2   :  { %v22_v1 = vunpack.c.l.bf16 %v21_v0  ;;  %v214_v3 = vld [vmem:[%s296_s1] sm:$0xff]   ;;  %v28_v6 = vand.u32 127, %v27_v5  ;;  %v217_v13 = vld [vmem:[%s296_s1 + $0x18] sm:$0xff]   ;;  %v219_v15 = vld [vmem:[%s296_s1 + $0x28] sm:$0xff]  }
   0x3   :  { %193 = vmatpush3.bf16.msra.mxu0 %v214_v3  ;;  %v218_v14 = vld [vmem:[%s296_s1 + $0x20] sm:$0xff]   ;;  %v220_v16 = vld [vmem:[%s296_s1 + $0x30] sm:$0xff]   ;;  %v221_v17 = vld [vmem:[%s296_s1 + $0x38] sm:$0xff]  }
   0x4   :  { %23 = vadd.xlane.f32.xlu0 %v22_v1  ;;  %194 = vmatprep.subr.bf16.mxu0 %v224_v2  ;;  %vm29_vm0 = vcmp.lt.s32.totalorder %v28_v6, 32  ;;  %v172_v22 = vld [vmem:[%s297_s3] ss:$0 sm:$0xff] }
   0x5   :  { %v173_v24 = vld [vmem:[%s298_s4] ss:$0 sm:$0xff] }
   0x6   :  { %v174_v28 = vld [vmem:[%s299_s2] ss:$0 sm:$0xff] }
   0x7   :  { %195 = vmatpush3.bf16.msra.mxu0 %v215_v4 }
   0x8   :  { %196 = vmatprep.subr.bf16.mxu0 %v224_v2 }
   0xb   :  { %197 = vmatpush3.bf16.msra.mxu0 %v216_v12 }
   0xc   :  { %198 = vmatprep.subr.bf16.mxu0 %v224_v2 }
   0xf   :  { %199 = vmatpush3.bf16.msra.mxu0 %v217_v13 }
  0x10   :  { %200 = vmatprep.subr.bf16.mxu0 %v224_v2 }
  0x13   :  { %201 = vmatpush3.bf16.msra.mxu0 %v218_v14 }
  0x14   :  { %202 = vmatprep.subr.bf16.mxu0 %v224_v2 }
  0x17   :  { %203 = vmatpush3.bf16.msra.mxu0 %v219_v15 }
  0x18   :  { %204 = vmatprep.subr.bf16.mxu0 %v224_v2 }
  0x1b   :  { %205 = vmatpush3.bf16.msra.mxu0 %v220_v16 }
  0x1c   :  { %206 = vmatprep.subr.bf16.mxu0 %v224_v2 }
  0x1f   :  { %207 = vmatpush3.bf16.msra.mxu0 %v221_v17 }
  0x91   :  { %v24_v7 = vpop.xlane.xlu0 %23 }
  0x92   :  { %v25_v8 = vmul.f32 0.03125, %v24_v7 }
  0x94   :  { %v26_v9 = vsub.f32 %v22_v1, %v25_v8 }
  0x96   :  { %v30_v10 = vsel %vm29_vm0, %v26_v9, 0.0 }
  0x97   :  { %v31_v11 = vmul.f32 %v30_v10, %v30_v10 }
  0x99   :  { %32 = vadd.xlane.f32.xlu0 %v31_v11 }
 0x126   :  { %v33_v18 = vpop.xlane.xlu0 %32 }
 0x127   :  { %v34_v19 = vmul.f32 0.03125, %v33_v18 }
 0x129   :  { %v35_v20 = vadd.f32 1e-06, %v34_v19 }
 0x12b   :  { %222 = vrsqrt.f32 %v35_v20 }
 0x135   :  { %v223_v21 = vpop.eup %222 }
 0x136   :  { %v37_v23 = vmul.f32 %v223_v21, %v30_v10 }
 0x138   :  { %v45_v25 = vmul.f32 %v172_v22, %v37_v23 }
 0x13a   :  { %v53_v26 = vadd.f32 %v173_v24, %v45_v25 }
 0x13c   :  { %v54_v27 = vpack.c.bf16 %v53_v26, %v53_v26 }
 0x13e   :  { %209 = vmatmul.mubr.bf16.vlgmr.msra.gmra.mrb[0].mxu0 %v54_v27 }
 0x211   :  { %v160_v29 = vpop.f32.mrb[0].mxu0 }
 0x212   :  { %v161_v30 = vadd.f32 %v174_v28, %v160_v29  ;;  %v210_v31 = vpop.f32.mrb[1].mxu0 }
 0x213   :  { %v163_v32 = vpop.f32.mrb[2].mxu0 }
 0x214   :  { %v166_v33 = vpack.c.bf16 %v161_v30, %v161_v30  ;;  %v211_v34 = vpop.f32.mrb[3].mxu0 }
 0x216   :  { %167 = vst [vmem:[%s300_s5] sm:$0xf] %v166_v33 }

// kernel: _lambda_.22
= control target key start
LH: loop header
LB: loop body
LE: loop exit
PB: predicated region body
PF: predicated region fallthrough
CT: control target
= control target key end

     0   :  { %v187_v0 = vmov 0.0   ;;  %vm188_vm0 = vmmov 0   ;;  %s250_s1 = inlined_call_operand.vmem [shape: bf16[128,128], index: 1, kind: input, shape index: {}]   ;;  %s251_s0 = inlined_call_operand.vmem [shape: bf16[8,128], index: 0, kind: input, shape index: {}]   ;;  %s252_s3 = inlined_call_operand.vmem [shape: bf16[8,128], index: 3, kind: input, shape index: {}]   ;;  %s253_s2 = inlined_call_operand.vmem [shape: f32[1,128], index: 2, kind: input, shape index: {}]   ;;  %s254_s4 = inlined_call_operand.vmem [shape: bf16[8,128], index: 4, kind: output, shape index: {}]  }
   0x1   :  { %157 = vmatprep.subr.bf16.mxu0 %v187_v0  ;;  %v179_v1 = vld [vmem:[%s250_s1] sm:$0xff]   ;;  %173 = vmatprep.mubr.msk.bf16.mxu0 %vm188_vm0, %v187_v0  ;;  %v180_v2 = vld [vmem:[%s250_s1 + $0x8] sm:$0xff]   ;;  %v181_v3 = vld [vmem:[%s250_s1 + $0x10] sm:$0xff]  }
   0x2   :  { %158 = vmatpush3.bf16.msra.mxu0 %v179_v1  ;;  %v182_v4 = vld [vmem:[%s250_s1 + $0x18] sm:$0xff]   ;;  %v183_v5 = vld [vmem:[%s250_s1 + $0x20] sm:$0xff]   ;;  %v184_v6 = vld [vmem:[%s250_s1 + $0x28] sm:$0xff]  }
   0x3   :  { %159 = vmatprep.subr.bf16.mxu0 %v187_v0  ;;  %v185_v7 = vld [vmem:[%s250_s1 + $0x30] sm:$0xff]   ;;  %v186_v8 = vld [vmem:[%s250_s1 + $0x38] sm:$0xff]   ;;  %v18_v9 = vld [vmem:[%s251_s0] sm:$0xf] }
   0x4   :  { %v130_v10 = vld [vmem:[%s252_s3] sm:$0xf] }
   0x5   :  { %v139_v11 = vld [vmem:[%s253_s2] ss:$0 sm:$0xff]  ;;  %v131_v12 = vunpack.c.l.bf16 %v130_v10 }
   0x6   :  { %160 = vmatpush3.bf16.msra.mxu0 %v180_v2 }
   0x7   :  { %161 = vmatprep.subr.bf16.mxu0 %v187_v0 }
   0xa   :  { %162 = vmatpush3.bf16.msra.mxu0 %v181_v3 }
   0xb   :  { %163 = vmatprep.subr.bf16.mxu0 %v187_v0 }
   0xe   :  { %164 = vmatpush3.bf16.msra.mxu0 %v182_v4 }
   0xf   :  { %165 = vmatprep.subr.bf16.mxu0 %v187_v0 }
  0x12   :  { %166 = vmatpush3.bf16.msra.mxu0 %v183_v5 }
  0x13   :  { %167 = vmatprep.subr.bf16.mxu0 %v187_v0 }
  0x16   :  { %168 = vmatpush3.bf16.msra.mxu0 %v184_v6 }
  0x17   :  { %169 = vmatprep.subr.bf16.mxu0 %v187_v0 }
  0x1a   :  { %170 = vmatpush3.bf16.msra.mxu0 %v185_v7 }
  0x1b   :  { %171 = vmatprep.subr.bf16.mxu0 %v187_v0 }
  0x1e   :  { %172 = vmatpush3.bf16.msra.mxu0 %v186_v8 }
  0x21   :  { %174 = vmatmul.mubr.bf16.vlgmr.msra.gmra.mrb[0].mxu0 %v18_v9 }
  0xf4   :  { %v124_v13 = vpop.f32.mrb[0].mxu0 }
  0xf5   :  { %v125_v14 = vadd.f32 %v139_v11, %v124_v13  ;;  %v175_v15 = vpop.f32.mrb[1].mxu0 }
  0xf6   :  { %v127_v16 = vpop.f32.mrb[2].mxu0 }
  0xf7   :  { %v132_v17 = vadd.f32 %v131_v12, %v125_v14  ;;  %v176_v18 = vpop.f32.mrb[3].mxu0 }
  0xf9   :  { %v133_v19 = vpack.c.bf16 %v132_v17, %v132_v17 }
  0xfb   :  { %134 = vst [vmem:[%s254_s4] sm:$0xf] %v133_v19 }

// kernel: _lambda_.17
= control target key start
LH: loop header
LB: loop body
LE: loop exit
PB: predicated region body
PF: predicated region fallthrough
CT: control target
= control target key end

     0   :  { %s910_s1 = inlined_call_operand.vmem [shape: bf16[768,128], index: 1, kind: input, shape index: {}]   ;;  %s911_s0 = inlined_call_operand.vmem [shape: bf16[8,768], index: 0, kind: input, shape index: {}]   ;;  %s912_s2 = inlined_call_operand.vmem [shape: f32[1,128], index: 2, kind: input, shape index: {}]   ;;  %s913_s3 = inlined_call_operand.vmem [shape: bf16[8,128], index: 3, kind: output, shape index: {}]  }
   0x1   :  { %v677_v0 = vld [vmem:[%s910_s1 + $0x40] sm:$0xff]   ;;  %v681_v4 = vld [vmem:[%s910_s1 + $0x48] sm:$0xff]   ;;  %v685_v8 = vld [vmem:[%s910_s1 + $0x50] sm:$0xff]  }
   0x2   :  { %v678_v1 = vld [vmem:[%s910_s1] sm:$0xff]   ;;  %611 = vmatprep.subr.bf16.mxu0 %v677_v0  ;;  %v682_v5 = vld [vmem:[%s910_s1 + $0x8] sm:$0xff]   ;;  %v686_v9 = vld [vmem:[%s910_s1 + $0x10] sm:$0xff]  }
   0x3   :  { %v679_v2 = vld [vmem:[%s910_s1 + $0xc0] sm:$0xff]   ;;  %612 = vmatpush3.bf16.msra.mxu0 %v678_v1  ;;  %v683_v6 = vld [vmem:[%s910_s1 + $0xc8] sm:$0xff]   ;;  %v687_v10 = vld [vmem:[%s910_s1 + $0xd0] sm:$0xff]  }
   0x4   :  { %v680_v3 = vld [vmem:[%s910_s1 + $0x80] sm:$0xff]   ;;  %633 = vmatprep.subr.bf16.mxu1 %v679_v2  ;;  %613 = vmatprep.subr.bf16.mxu0 %v681_v4  ;;  %v684_v7 = vld [vmem:[%s910_s1 + $0x88] sm:$0xff]   ;;  %v688_v11 = vld [vmem:[%s910_s1 + $0x90] sm:$0xff]  }
   0x5   :  { %634 = vmatpush3.bf16.msra.mxu1 %v680_v3  ;;  %v689_v12 = vld [vmem:[%s910_s1 + $0x58] sm:$0xff]   ;;  %v693_v16 = vld [vmem:[%s910_s1 + $0x60] sm:$0xff]   ;;  %v697_v20 = vld [vmem:[%s910_s1 + $0x68] sm:$0xff]  }
   0x6   :  { %635 = vmatprep.subr.bf16.mxu1 %v683_v6  ;;  %v690_v13 = vld [vmem:[%s910_s1 + $0x18] sm:$0xff]   ;;  %v694_v17 = vld [vmem:[%s910_s1 + $0x20] sm:$0xff]   ;;  %v698_v21 = vld [vmem:[%s910_s1 + $0x28] sm:$0xff]  }
   0x7   :  { %614 = vmatpush3.bf16.msra.mxu0 %v682_v5  ;;  %v691_v14 = vld [vmem:[%s910_s1 + $0xd8] sm:$0xff]   ;;  %v695_v18 = vld [vmem:[%s910_s1 + $0xe0] sm:$0xff]   ;;  %v699_v22 = vld [vmem:[%s910_s1 + $0xe8] sm:$0xff]  }
   0x8   :  { %615 = vmatprep.subr.bf16.mxu0 %v685_v8  ;;  %v692_v15 = vld [vmem:[%s910_s1 + $0x98] sm:$0xff]   ;;  %v696_v19 = vld [vmem:[%s910_s1 + $0xa0] sm:$0xff]   ;;  %v700_v23 = vld [vmem:[%s910_s1 + $0xa8] sm:$0xff]  }
   0x9   :  { %636 = vmatpush3.bf16.msra.mxu1 %v684_v7  ;;  %v701_v24 = vld [vmem:[%s910_s1 + $0x70] sm:$0xff]   ;;  %v705_v28 = vld [vmem:[%s910_s1 + $0x78] sm:$0xff]   ;;  %v15_v31 = vld [vmem:[%s911_s0] sm:$0xff] }
   0xa   :  { %637 = vmatprep.subr.bf16.mxu1 %v687_v10  ;;  %v702_v25 = vld [vmem:[%s910_s1 + $0x30] sm:$0xff]   ;;  %v706_v29 = vld [vmem:[%s910_s1 + $0x38] sm:$0xff]   ;;  %v557_v32 = vcombine.low %v15_v31, %v15_v31  ;;  %v558_v33 = vcombine.high %v15_v31, %v15_v31  ;;  %v711_v35 = vld [vmem:[%s910_s1 + $0x140] sm:$0xff]  }
   0xb   :  { %616 = vmatpush3.bf16.msra.mxu0 %v686_v9  ;;  %v703_v26 = vld [vmem:[%s910_s1 + $0xf0] sm:$0xff]   ;;  %v707_v30 = vld [vmem:[%s910_s1 + $0xf8] sm:$0xff]   ;;  %v16_v36 = vld [vmem:[%s911_s0 + $0x8] sm:$0xff] }
   0xc   :  { %617 = vmatprep.subr.bf16.mxu0 %v689_v12  ;;  %v704_v27 = vld [vmem:[%s910_s1 + $0xb0] sm:$0xff]   ;;  %v710_v34 = vld [vmem:[%s910_s1 + $0xb8] sm:$0xff]   ;;  %462 = vmatprep.mubr.bf16.mxu0 %v558_v33  ;;  %v559_v37 = vcombine.low %v16_v36, %v16_v36  ;;  %v560_v38 = vcombine.high %v16_v36, %v16_v36  ;;  %v714_v39 = vld [vmem:[%s910_s1 + $0x100] sm:$0xff]  }
   0xd   :  { %638 = vmatpush3.bf16.msra.mxu1 %v688_v11  ;;  %v715_v40 = vld [vmem:[%s910_s1 + $0x148] sm:$0xff]   ;;  %v717_v42 = vld [vmem:[%s910_s1 + $0x150] sm:$0xff]   ;;  %v719_v44 = vld [vmem:[%s910_s1 + $0x158] sm:$0xff]  }
   0xe   :  { %639 = vmatprep.subr.bf16.mxu1 %v691_v14  ;;  %502 = vmatprep.mubr.bf16.mxu1 %v560_v38  ;;  %v716_v41 = vld [vmem:[%s910_s1 + $0x108] sm:$0xff]   ;;  %v718_v43 = vld [vmem:[%s910_s1 + $0x110] sm:$0xff]   ;;  %v720_v45 = vld [vmem:[%s910_s1 + $0x118] sm:$0xff]  }
   0xf   :  { %618 = vmatpush3.bf16.msra.mxu0 %v690_v13  ;;  %v721_v46 = vld [vmem:[%s910_s1 + $0x160] sm:$0xff]   ;;  %v17_v48 = vld [vmem:[%s911_s0 + $0x10] sm:$0xff]  ;;  %v723_v49 = vld [vmem:[%s910_s1 + $0x168] sm:$0xff]  }
  0x10   :  { %619 = vmatprep.subr.bf16.mxu0 %v693_v16  ;;  %v722_v47 = vld [vmem:[%s910_s1 + $0x120] sm:$0xff]   ;;  %v562_v50 = vcombine.high %v17_v48, %v17_v48  ;;  %v724_v51 = vld [vmem:[%s910_s1 + $0x128] sm:$0xff]   ;;  %v725_v52 = vld [vmem:[%s910_s1 + $0x170] sm:$0xff]   ;;  %v561_v56 = vcombine.low %v17_v48, %v17_v48 }
  0x11   :  { %640 = vmatpush3.bf16.msra.mxu1 %v692_v15  ;;  %v726_v53 = vld [vmem:[%s910_s1 + $0x130] sm:$0xff]   ;;  %v727_v54 = vld [vmem:[%s910_s1 + $0x178] sm:$0xff]   ;;  %v556_v58 = vld [vmem:[%s912_s2] ss:$0 sm:$0xff] }
  0x12   :  { %641 = vmatprep.subr.bf16.mxu1 %v695_v18  ;;  %v728_v55 = vld [vmem:[%s910_s1 + $0x138] sm:$0xff]  }
  0x13   :  { %620 = vmatpush3.bf16.msra.mxu0 %v694_v17 }
  0x14   :  { %621 = vmatprep.subr.bf16.mxu0 %v697_v20 }
  0x15   :  { %642 = vmatpush3.bf16.msra.mxu1 %v696_v19 }
  0x16   :  { %643 = vmatprep.subr.bf16.mxu1 %v699_v22 }
  0x17   :  { %622 = vmatpush3.bf16.msra.mxu0 %v698_v21 }
  0x18   :  { %623 = vmatprep.subr.bf16.mxu0 %v701_v24 }
  0x19   :  { %644 = vmatpush3.bf16.msra.mxu1 %v700_v23 }
  0x1a   :  { %645 = vmatprep.subr.bf16.mxu1 %v703_v26 }
  0x1b   :  { %624 = vmatpush3.bf16.msra.mxu0 %v702_v25 }
  0x1c   :  { %625 = vmatprep.subr.bf16.mxu0 %v705_v28 }
  0x1d   :  { %646 = vmatpush3.bf16.msra.mxu1 %v704_v27 }
  0x1e   :  { %647 = vmatprep.subr.bf16.mxu1 %v707_v30 }
  0x1f   :  { %626 = vmatpush3.bf16.msra.mxu0 %v706_v29 }
  0x20   :  { %655 = vmatprep.subr.bf16.mxu0 %v711_v35 }
  0x21   :  { %648 = vmatpush3.bf16.msra.mxu1 %v710_v34 }
  0x22   :  { %463 = vmatmul.mubr.bf16.vlgmr.msra.gmra.mrb[0].mxu0 %v557_v32 }
  0x23   :  { %656 = vmatpush3.bf16.msra.mxu0 %v714_v39  ;;  %542 = vmatprep.mubr.bf16.mxu0 %v562_v50 }
  0x24   :  { %503 = vmatmul.mubr.bf16.vlgmr.msra.gmra.mrb[0].mxu1 %v559_v37  ;;  %657 = vmatprep.subr.bf16.mxu0 %v715_v40 }
  0x27   :  { %658 = vmatpush3.bf16.msra.mxu0 %v716_v41 }
  0x28   :  { %659 = vmatprep.subr.bf16.mxu0 %v717_v42 }
  0x2b   :  { %660 = vmatpush3.bf16.msra.mxu0 %v718_v43 }
  0x2c   :  { %661 = vmatprep.subr.bf16.mxu0 %v719_v44 }
  0x2f   :  { %662 = vmatpush3.bf16.msra.mxu0 %v720_v45 }
  0x30   :  { %663 = vmatprep.subr.bf16.mxu0 %v721_v46 }
  0x33   :  { %664 = vmatpush3.bf16.msra.mxu0 %v722_v47 }
  0x34   :  { %665 = vmatprep.subr.bf16.mxu0 %v723_v49 }
  0x37   :  { %666 = vmatpush3.bf16.msra.mxu0 %v724_v51 }
  0x38   :  { %667 = vmatprep.subr.bf16.mxu0 %v725_v52 }
  0x3b   :  { %668 = vmatpush3.bf16.msra.mxu0 %v726_v53 }
  0x3c   :  { %669 = vmatprep.subr.bf16.mxu0 %v727_v54 }
  0x3f   :  { %670 = vmatpush3.bf16.msra.mxu0 %v728_v55 }
  0x42   :  { %543 = vmatmul.mubr.bf16.vlgmr.msra.gmra.mrb[4].mxu0 %v561_v56 }
  0xf5   :  { %v627_v57 = vpop.f32.mrb[0].mxu0 }
  0xf6   :  { %v628_v59 = vpop.f32.mrb[1].mxu0 }
  0xf7   :  { %v629_v60 = vadd.f32 %v628_v59, %v627_v57  ;;  %v630_v61 = vpop.f32.mrb[2].mxu0  ;;  %v649_v62 = vpop.f32.mrb[0].mxu1 }
  0xf8   :  { %v631_v63 = vpop.f32.mrb[3].mxu0  ;;  %v650_v0 = vpop.f32.mrb[1].mxu1 }
  0xf9   :  { %v465_v1 = vadd.f32 %v629_v60, %v556_v58  ;;  %v651_v2 = vadd.f32 %v650_v0, %v649_v62  ;;  %v652_v3 = vpop.f32.mrb[2].mxu1 }
  0xfa   :  { %v653_v4 = vpop.f32.mrb[3].mxu1 }
  0xfb   :  { %v505_v5 = vadd.f32 %v651_v2, %v465_v1 }
 0x115   :  { %v671_v6 = vpop.f32.mrb[4].mxu0 }
 0x116   :  { %v672_v7 = vpop.f32.mrb[5].mxu0 }
 0x117   :  { %v673_v8 = vadd.f32 %v672_v7, %v671_v6  ;;  %v674_v9 = vpop.f32.mrb[6].mxu0 }
 0x118   :  { %v675_v10 = vpop.f32.mrb[7].mxu0 }
 0x119   :  { %v545_v11 = vadd.f32 %v673_v8, %v505_v5 }
 0x11b   :  { %v550_v12 = vpack.c.bf16 %v545_v11, %v545_v11 }
 0x11d   :  { %551 = vst [vmem:[%s913_s3] sm:$0xf] %v550_v12 }

// kernel: _lambda_.21
= control target key start
LH: loop header
LB: loop body
LE: loop exit
PB: predicated region body
PF: predicated region fallthrough
CT: control target
= control target key end

     0   :  { %s834_s12 = smov 0   ;;  %s836_s13 = smov 0   ;;  %s918_s0 = inlined_call_operand.vmem [shape: bf16[2,8,32], index: 0, kind: input, shape index: {}]   ;;  %s919_s1 = inlined_call_operand.vmem [shape: bf16[2,8,32], index: 1, kind: input, shape index: {}]   ;;  %s920_s2 = inlined_call_operand.vmem [shape: bf16[2,8,32], index: 2, kind: input, shape index: {}]   ;;  %s921_s3 = inlined_call_operand.vmem [shape: bf16[2,8,32], index: 3, kind: output, shape index: {}]  }
   0x1   :  { %s838_s14 = smov 0  }
   0x2 LB: > { %s32_s15 = sadd.s32 1, %s801_s13  ;;  %p692_p0 = scmp.ge.s32.totalorder %s805_s14, 1  ;;  %s805_s14 = sphi %s838_s14, %s13_s14   ;;  %s801_s13 = sphi %s836_s13, %s923_s13   ;;  %s797_s12 = sphi %s834_s12, %s922_s12  }
   0x3   : > { %p34_p1 = scmp.ge.s32.totalorder %s32_s15, 2  ;;  %p190_p2 = scmp.lt.s32.totalorder %s805_s14, 3 }
   0x5   : > { %s925_s15 = smov (%p34_p1, %s32_s15), 0  ;;  %p191_p3 = pnand %p692_p0, %p190_p2 }
   0x6   : > { %p232_p4 = scmp.lt.s32.totalorder (!%p191_p3), %s797_s12, 1  ;;  %vm268_vm0 = vcmask (!%p191_p3), 130048   ;;  %vm265_vm1 = vcmask (!%p191_p3), 15360   ;;  %v807_v0 = vmov (!%p191_p3), 0.0   ;;  %vm808_vm2 = vmmov (!%p191_p3), 0   ;;  %s811_s23 = smov (!%p191_p3), 112  }
   0x7   : > { %194 = sbr.rel (%p191_p3) target bundleno = 1453 (0x5ad), region = 32  ;;  %713 = vmatprep.subr.bf16.mxu0 (!%p191_p3), %v807_v0  ;;  %269 = vst.msk [vmem:[#allocation4] sm:$0xff] (!%p191_p3), %vm268_vm0, %v807_v0  ;;  %270 = vst.msk [vmem:[#allocation4 + $0x8] sm:$0xff] (!%p191_p3), %vm268_vm0, %v807_v0  ;;  %715 = vmatprep.mubr.msk.bf16.mxu0 (!%p191_p3), %vm808_vm2, %v807_v0  ;;  %v809_v1 = vmov (!%p191_p3), -1e+30   ;;  %v275_v8 = vlaneseq (!%p191_p3)  ;;  %vm332_vm4 = vcmask (!%p191_p3), 64512  }
   0x8   : > { %267 = vst.msk [vmem:[#allocation3] sm:$0xff] (!%p191_p3), %vm265_vm1, %v807_v0  ;;  %266 = vst.msk [vmem:[#allocation2] sm:$0xff] (!%p191_p3), %vm265_vm1, %v809_v1  ;;  %719 = vmatprep.subr.bf16.mxu1 (!%p191_p3), %v807_v0  ;;  %721 = vmatprep.mubr.msk.bf16.mxu1 (!%p191_p3), %vm808_vm2, %v807_v0  ;;  %v810_v17 = vmov (!%p191_p3), 0   ;;  %vm354_vm5 = vcmask (!%p191_p3), 7168   ;;  %vm367_vm6 = vcmask (!%p191_p3), 1043456   ;;  %v812_v53 = vmov (!%p191_p3), 1  }
   0x9   : > { %v276_v9 = vand.u32 (!%p191_p3), 127, %v275_v8  ;;  %768 = vset.pattern.permute.xlu0 (!%p191_p3), %v810_v17  ;;  %769 = vset.pattern.permute.xlu1 (!%p191_p3), %v812_v53  ;;  %vm490_vm7 = vcmask (!%p191_p3), 15368   ;;  %s813_s27 = smov (!%p191_p3), 16   ;;  %vm579_vm8 = vcmask (!%p191_p3), 257024  }
   0xb   : > { %vm279_vm3 = vcmp.lt.s32.totalorder (!%p191_p3), %v276_v9, 4 }
   0xc   : > { %v280_v10 = vsel (!%p191_p3), %vm279_vm3, 0.0, %v809_v1 }
   0xe   : > { %s927_s12 = smov (!%p232_p4, %s797_s12), 1  ;;  %v493_v8 = vld [vmem:[#allocation4 + $0x8] sm:$0xff] }
   0xf   : > { %s863_s16 = sshll.u32 %s927_s12, 2  ;;  %v331_v19 = vld [vmem:[#allocation2] sm:$0xff]  ;;  %v348_v39 = vld [vmem:[#allocation3] sm:$0xff] }
  0x10   : > { %s245_s19 = scalar_lea.vmem %s919_s1, %s863_s16  ;;  %s238_s22 = scalar_lea.vmem %s918_s0, %s863_s16 }
  0x11   : > { %v272_v2 = vld [vmem:[%s245_s19] sm:$0xf]  ;;  %s252_s26 = scalar_lea.vmem %s920_s2, %s863_s16  ;;  %s259_s30 = scalar_lea.vmem %s921_s3, %s863_s16 }
  0x12   : > { %v271_v3 = vld [vmem:[%s238_s22] sm:$0xf]  ;;  %v289_v4 = vsel %vm268_vm0, %v272_v2, 0  ;;  %v699_v18 = vcombine.low %v272_v2, %v272_v2 }
  0x13   : > { %v281_v5 = vunpack.c.l.bf16 %v271_v3  ;;  %714 = vmatpush3.bf16.xpose.msra.mxu0 %v289_v4  ;;  %v273_v21 = vld [vmem:[%s252_s26] sm:$0xf] }
  0x14   : > { %731 = vmatprep.subr.bf16.mxu0 %v807_v0  ;;  %420 = vrot.lane.b32.xlu1 %v699_v18, %s811_s23  ;;  %v701_v24 = vcombine.low %v273_v21, %v273_v21  ;;  %v369_v25 = vsel %vm367_vm6, %v273_v21, 0 }
  0x15   : > { %v282_v6 = vmul.f32 0.25, %v281_v5  ;;  %720 = vmatpush3.bf16.msra.mxu1 %v369_v25 }
  0x16   : > { %725 = vmatprep.subr.bf16.mxu1 %v807_v0 }
  0x17   : > { %v283_v7 = vpack.c.bf16 %v282_v6, %v282_v6 }
  0x19   : > { %415 = vrot.lane.b32.xlu1 %v283_v7, %s811_s23 }
  0x1a   : > { %716 = vmatmul.mubr.msk.bf16.vlgmr.msra.gmra.mrb[0].mxu0 %vm268_vm0, %v283_v7 }
  0x1b   : > { %733 = vmatprep.mubr.msk.bf16.mxu0 %vm808_vm2, %v807_v0 }
  0x86   : > { %v421_v31 = vpop.permute.xlu1 %420 }
  0x87   : > { %v426_v33 = vsel %vm268_vm0, %v421_v31, 0 }
  0x8b   : > { %v416_v36 = vpop.permute.xlu1 %415 }
  0xed   : > { %v325_v11 = vpop.f32.mrb[0].mxu0 }
  0xee   : > { %v326_v12 = vadd.f32 %v325_v11, %v280_v10  ;;  %v717_v13 = vpop.f32.mrb[1].mxu0 }
  0xef   : > { %v328_v14 = vpop.f32.mrb[2].mxu0 }
  0xf0   : > { %v718_v15 = vpop.f32.mrb[3].mxu0  ;;  %v333_v16 = vsel %vm332_vm4, %v326_v12, -inf }
  0xf1   : > { %334 = vmax.xlane.f32.xlu0 %v333_v16 }
 0x17e   : > { %v335_v20 = vpop.xlane.xlu0 %334 }
 0x17f   : > { %v336_v22 = vmax.f32 %v331_v19, %v335_v20  ;;  %v356_v20 = vld [vmem:[#allocation4] sm:$0xff] }
 0x181   : > { %v337_v23 = vsub.f32 %v331_v19, %v336_v22  ;;  %413 = vst.msk [vmem:[#allocation2] sm:$0xff] %vm354_vm5, %v336_v22  ;;  %342 = vperm.xlu0 %768, %v336_v22  }
 0x183   : > { %v338_v37 = vmul.f32 1.442695, %v337_v23 }
 0x185   : > { %504 = vrot.lane.b32.xlu0 %v701_v24, %s811_s23 }
 0x186   : > { %770 = vset.pattern.permute.xlu0 %v812_v53 }
 0x188   : > { %v468_v55 = vld [vmem:[#allocation2] sm:$0xff] }
 0x200   : > { %v343_v26 = vpop.permute.xlu0 %342 }
 0x201   : > { %v345_v27 = vsub.f32 %v326_v12, %v343_v26 }
 0x203   : > { %v346_v28 = vmul.f32 1.442695, %v345_v27 }
 0x204   : > { %v505_v29 = vpop.permute.xlu0 %504 }
 0x205   : > { %773 = vpow2.f32 %v346_v28  ;;  %v510_v30 = vsel %vm367_vm6, %v505_v29, 0 }
 0x206   : > { %732 = vmatpush3.bf16.msra.mxu0 %v510_v30  ;;  %775 = vpow2.f32 %v338_v37 }
 0x20f   : > { %v774_v32 = vpop.eup %773 }
 0x210   : > { %v350_v34 = vsel %vm332_vm4, %v774_v32, 0.0  ;;  %v363_v35 = vpack.c.bf16 %v774_v32, %v774_v32  ;;  %v776_v38 = vpop.eup %775 }
 0x211   : > { %351 = vadd.xlane.f32.xlu0 %v350_v34  ;;  %v349_v40 = vmul.f32 %v776_v38, %v348_v39 }
 0x212   : > { %722 = vmatmul.mubr.msk.bf16.vlgmr.msra.gmra.mrb[0].mxu1 %vm332_vm4, %v363_v35 }
 0x213   : > { %726 = vmatpush3.bf16.xpose.msra.mxu1 %v426_v33  ;;  %727 = vmatprep.mubr.msk.bf16.mxu1 %vm808_vm2, %v807_v0 }
 0x21a   : > { %728 = vmatmul.mubr.msk.bf16.vlgmr.msra.gmra.mrb[4].mxu1 %vm268_vm0, %v416_v36 }
 0x29e   : > { %v352_v41 = vpop.xlane.xlu0 %351 }
 0x29f   : > { %v353_v42 = vadd.f32 %v352_v41, %v349_v40 }
 0x2a1   : > { %355 = vst.msk [vmem:[#allocation3] sm:$0xff] %vm354_vm5, %v353_v42 }
 0x2a8   : > { %v484_v2 = vld [vmem:[#allocation3] sm:$0xff] }
 0x2e5   : > { %v893_v43 = vpop.f32.mrb[0].mxu1 }
 0x2e6   : > { %v723_v44 = vpop.f32.mrb[1].mxu1 }
 0x2e7   : > { %v408_v45 = vpop.f32.mrb[2].mxu1 }
 0x2e8   : > { %v724_v46 = vpop.f32.mrb[3].mxu1 }
 0x2ed   : > { %v462_v47 = vpop.f32.mrb[4].mxu1 }
 0x2ee   : > { %v463_v48 = vadd.f32 %v462_v47, %v280_v10  ;;  %v729_v49 = vpop.f32.mrb[5].mxu1 }
 0x2ef   : > { %v465_v50 = vpop.f32.mrb[6].mxu1 }
 0x2f0   : > { %v730_v51 = vpop.f32.mrb[7].mxu1  ;;  %v469_v52 = vsel %vm332_vm4, %v463_v48, -inf }
 0x2f1   : > { %470 = vmax.xlane.f32.xlu1 %v469_v52 }
 0x37e   : > { %v471_v54 = vpop.xlane.xlu1 %470 }
 0x37f   : > { %v472_v56 = vmax.f32 %v468_v55, %v471_v54 }
 0x381   : > { %v473_v57 = vsub.f32 %v468_v55, %v472_v56  ;;  %554 = vst.msk [vmem:[#allocation2] sm:$0xff] %vm490_vm7, %v472_v56  ;;  %478 = vperm.xlu1 %769, %v472_v56  }
 0x383   : > { %v474_v58 = vmul.f32 1.442695, %v473_v57 }
 0x385   : > { %777 = vpow2.f32 %v474_v58 }
 0x38f   : > { %v778_v59 = vpop.eup %777 }
 0x390   : > { %496 = vperm.xlu0 %770, %v778_v59   ;;  %v485_v3 = vmul.f32 %v778_v59, %v484_v2 }
 0x400   : > { %v479_v60 = vpop.permute.xlu1 %478 }
 0x401   : > { %v481_v61 = vsub.f32 %v463_v48, %v479_v60 }
 0x403   : > { %v482_v62 = vmul.f32 1.442695, %v481_v61 }
 0x405   : > { %779 = vpow2.f32 %v482_v62 }
 0x40f   : > { %v780_v63 = vpop.eup %779  ;;  %v497_v9 = vpop.permute.xlu0 %496 }
 0x410   : > { %v486_v0 = vsel %vm332_vm4, %v780_v63, 0.0  ;;  %v500_v1 = vpack.c.bf16 %v780_v63, %v780_v63  ;;  %v499_v10 = vmul.f32 %v497_v9, %v493_v8 }
 0x411   : > { %487 = vadd.xlane.f32.xlu1 %v486_v0 }
 0x412   : > { %734 = vmatmul.mubr.msk.bf16.vlgmr.msra.gmra.mrb[4].mxu0 %vm332_vm4, %v500_v1 }
 0x49e   : > { %v488_v4 = vpop.xlane.xlu1 %487 }
 0x49f   : > { %v489_v5 = vadd.f32 %v488_v4, %v485_v3 }
 0x4a1   : > { %491 = vst.msk [vmem:[#allocation3] sm:$0xff] %vm490_vm7, %v489_v5 }
 0x4a8   : > { %v559_v6 = vld [vmem:[#allocation3] sm:$0xff] }
 0x4a9   : > { %781 = vrcp.f32 %v559_v6 }
 0x4b3   : > { %v782_v7 = vpop.eup %781 }
 0x4b4   : > { %569 = vperm.xlu1 %769, %v782_v7  }
 0x4b8   : > { %771 = vset.pattern.permute.xlu1 %v810_v17 }
 0x4b9   : > { %359 = vperm.xlu1 %771, %v776_v38  }
 0x4bd   : > { %563 = vperm.xlu1 %771, %v782_v7  }
 0x4e5   : > { %v546_v11 = vpop.f32.mrb[4].mxu0 }
 0x4e6   : > { %v552_v12 = vadd.f32 %v546_v11, %v499_v10  ;;  %v735_v13 = vpop.f32.mrb[5].mxu0 }
 0x4e7   : > { %v549_v14 = vpop.f32.mrb[6].mxu0 }
 0x4e8   : > { %553 = vst.msk [vmem:[#allocation4 + $0x8] sm:$0xff] %vm268_vm0, %v552_v12  ;;  %v736_v15 = vpop.f32.mrb[7].mxu0 }
 0x4ef   : > { %v567_v18 = vld [vmem:[#allocation4 + $0x8] sm:$0xff] }
 0x533   : > { %v570_v16 = vpop.permute.xlu1 %569 }
 0x534   : > { %v572_v19 = vmul.f32 %v570_v16, %v567_v18 }
 0x536   : > { %574 = vrot.lane.b32.xlu1 %v572_v19, %s813_s27 }
 0x538   : > { %v360_v17 = vpop.permute.xlu1 %359 }
 0x539   : > { %v362_v21 = vmul.f32 %v360_v17, %v356_v20 }
 0x53b   : > { %v411_v22 = vadd.f32 %v893_v43, %v362_v21 }
 0x53c   : > { %v564_v24 = vpop.permute.xlu1 %563 }
 0x53d   : > { %412 = vst.msk [vmem:[#allocation4] sm:$0xff] %vm268_vm0, %v411_v22 }
 0x544   : > { %v558_v23 = vld [vmem:[#allocation4] sm:$0xff] }
 0x545   : > { %v566_v25 = vmul.f32 %v564_v24, %v558_v23 }
 0x5a8   : > { %v575_v26 = vpop.permute.xlu1 %574 }
 0x5a9   : > { %v577_v27 = vsel %vm268_vm0, %v566_v25, %v575_v26 }
 0x5aa   : > { %v578_v28 = vpack.c.bf16 %v577_v27, %v577_v27 }
 0x5ac   : > { %580 = vst.msk [vmem:[%s259_s30] sm:$0xf] %vm579_vm8, %v578_v28 }
 0x5ad PF: > { %s13_s14 = sadd.s32 1, %s805_s14   ;;  %s922_s12 = smov %s801_s13 }
 0x5ae   : > { %p10_p5 = scmp.ge.s32.totalorder %s13_s14, 4   ;;  %s923_s13 = smov %s925_s15 }
 0x5b0   :  { %12 = sbr.rel (!%p10_p5) target bundleno = 2 (0x2), region = 77 }

// kernel: _lambda_.23
= control target key start
LH: loop header
LB: loop body
LE: loop exit
PB: predicated region body
PF: predicated region fallthrough
CT: control target
= control target key end

     0   :  { %v235_v2 = vmov 0.0   ;;  %v27_v5 = vlaneseq  ;;  %vm236_vm1 = vmmov 0   ;;  %s306_s0 = inlined_call_operand.vmem [shape: bf16[8,128], index: 0, kind: input, shape index: {}]   ;;  %s307_s1 = inlined_call_operand.vmem [shape: bf16[128,128], index: 1, kind: input, shape index: {}]   ;;  %s308_s3 = inlined_call_operand.vmem [shape: f32[1,128], index: 3, kind: input, shape index: {}]   ;;  %s309_s4 = inlined_call_operand.vmem [shape: f32[1,128], index: 4, kind: input, shape index: {}, may-alias: {2,4}]   ;;  %s310_s2 = inlined_call_operand.vmem [shape: f32[1,128], index: 2, kind: input, shape index: {}, may-alias: {2,4}]   ;;  %s311_s5 = inlined_call_operand.vmem [shape: bf16[8,128], index: 5, kind: output, shape index: {}]  }
   0x1   :  { %v21_v0 = vld [vmem:[%s306_s0] sm:$0xf]  ;;  %201 = vmatprep.subr.bf16.mxu0 %v235_v2  ;;  %v224_v4 = vld [vmem:[%s307_s1 + $0x8] sm:$0xff]   ;;  %v225_v12 = vld [vmem:[%s307_s1 + $0x10] sm:$0xff]   ;;  %217 = vmatprep.mubr.msk.bf16.mxu0 %vm236_vm1, %v235_v2 }
   0x2   :  { %v22_v1 = vunpack.c.l.bf16 %v21_v0  ;;  %v223_v3 = vld [vmem:[%s307_s1] sm:$0xff]   ;;  %v28_v6 = vand.u32 127, %v27_v5  ;;  %v226_v13 = vld [vmem:[%s307_s1 + $0x18] sm:$0xff]   ;;  %v228_v15 = vld [vmem:[%s307_s1 + $0x28] sm:$0xff]  }
   0x3   :  { %202 = vmatpush3.bf16.msra.mxu0 %v223_v3  ;;  %v227_v14 = vld [vmem:[%s307_s1 + $0x20] sm:$0xff]   ;;  %v229_v16 = vld [vmem:[%s307_s1 + $0x30] sm:$0xff]   ;;  %v230_v17 = vld [vmem:[%s307_s1 + $0x38] sm:$0xff]  }
   0x4   :  { %23 = vadd.xlane.f32.xlu0 %v22_v1  ;;  %203 = vmatprep.subr.bf16.mxu0 %v235_v2  ;;  %vm29_vm0 = vcmp.lt.s32.totalorder %v28_v6, 32  ;;  %v181_v22 = vld [vmem:[%s308_s3] ss:$0 sm:$0xff] }
   0x5   :  { %v182_v24 = vld [vmem:[%s309_s4] ss:$0 sm:$0xff] }
   0x6   :  { %v183_v28 = vld [vmem:[%s310_s2] ss:$0 sm:$0xff] }
   0x7   :  { %204 = vmatpush3.bf16.msra.mxu0 %v224_v4 }
   0x8   :  { %205 = vmatprep.subr.bf16.mxu0 %v235_v2 }
   0xb   :  { %206 = vmatpush3.bf16.msra.mxu0 %v225_v12 }
   0xc   :  { %207 = vmatprep.subr.bf16.mxu0 %v235_v2 }
   0xf   :  { %208 = vmatpush3.bf16.msra.mxu0 %v226_v13 }
  0x10   :  { %209 = vmatprep.subr.bf16.mxu0 %v235_v2 }
  0x13   :  { %210 = vmatpush3.bf16.msra.mxu0 %v227_v14 }
  0x14   :  { %211 = vmatprep.subr.bf16.mxu0 %v235_v2 }
  0x17   :  { %212 = vmatpush3.bf16.msra.mxu0 %v228_v15 }
  0x18   :  { %213 = vmatprep.subr.bf16.mxu0 %v235_v2 }
  0x1b   :  { %214 = vmatpush3.bf16.msra.mxu0 %v229_v16 }
  0x1c   :  { %215 = vmatprep.subr.bf16.mxu0 %v235_v2 }
  0x1f   :  { %216 = vmatpush3.bf16.msra.mxu0 %v230_v17 }
  0x91   :  { %v24_v7 = vpop.xlane.xlu0 %23 }
  0x92   :  { %v25_v8 = vmul.f32 0.03125, %v24_v7 }
  0x94   :  { %v26_v9 = vsub.f32 %v22_v1, %v25_v8 }
  0x96   :  { %v30_v10 = vsel %vm29_vm0, %v26_v9, 0.0 }
  0x97   :  { %v31_v11 = vmul.f32 %v30_v10, %v30_v10 }
  0x99   :  { %32 = vadd.xlane.f32.xlu0 %v31_v11 }
 0x126   :  { %v33_v18 = vpop.xlane.xlu0 %32 }
 0x127   :  { %v34_v19 = vmul.f32 0.03125, %v33_v18 }
 0x129   :  { %v35_v20 = vadd.f32 1e-06, %v34_v19 }
 0x12b   :  { %231 = vrsqrt.f32 %v35_v20 }
 0x135   :  { %v232_v21 = vpop.eup %231 }
 0x136   :  { %v37_v23 = vmul.f32 %v232_v21, %v30_v10 }
 0x138   :  { %v45_v25 = vmul.f32 %v181_v22, %v37_v23 }
 0x13a   :  { %v53_v26 = vadd.f32 %v182_v24, %v45_v25 }
 0x13c   :  { %v54_v27 = vpack.c.bf16 %v53_v26, %v53_v26 }
 0x13e   :  { %218 = vmatmul.mubr.bf16.vlgmr.msra.gmra.mrb[0].mxu0 %v54_v27 }
 0x211   :  { %v160_v29 = vpop.f32.mrb[0].mxu0 }
 0x212   :  { %v161_v30 = vadd.f32 %v183_v28, %v160_v29  ;;  %v219_v31 = vpop.f32.mrb[1].mxu0 }
 0x213   :  { %v163_v32 = vpop.f32.mrb[2].mxu0 }
 0x214   :  { %v167_v33 = vmul.f32 0.044715, %v161_v30  ;;  %v220_v34 = vpop.f32.mrb[3].mxu0  ;;  %v166_v40 = vmul.f32 0.5, %v161_v30 }
 0x216   :  { %v168_v35 = vmul.f32 %v167_v33, %v161_v30 }
 0x218   :  { %v169_v36 = vmul.f32 %v168_v35, %v161_v30 }
 0x21a   :  { %v170_v37 = vadd.f32 %v169_v36, %v161_v30 }
 0x21c   :  { %v171_v38 = vmul.f32 0.7978846, %v170_v37 }
 0x21e   :  { %233 = vtanh.f32 %v171_v38 }
 0x228   :  { %v234_v39 = vpop.eup %233 }
 0x229   :  { %v173_v41 = vadd.f32 1.0, %v234_v39 }
 0x22b   :  { %v174_v42 = vmul.f32 %v173_v41, %v166_v40 }
 0x22d   :  { %v175_v43 = vpack.c.bf16 %v174_v42, %v174_v42 }
 0x22f   :  { %176 = vst [vmem:[%s311_s5] sm:$0xf] %v175_v43 }

// kernel: _lambda_.32
= control target key start
LH: loop header
LB: loop body
LE: loop exit
PB: predicated region body
PF: predicated region fallthrough
CT: control target
= control target key end

     0   :  { %v211_v0 = vmov 0.0   ;;  %vm212_vm0 = vmmov 0   ;;  %v127_v14 = vlaneseq  ;;  %s274_s1 = inlined_call_operand.vmem [shape: bf16[128,128], index: 1, kind: input, shape index: {}]   ;;  %s275_s0 = inlined_call_operand.vmem [shape: bf16[8,128], index: 0, kind: input, shape index: {}]   ;;  %s276_s2 = inlined_call_operand.vmem [shape: f32[1,128], index: 2, kind: input, shape index: {}]   ;;  %s277_s3 = inlined_call_operand.vmem [shape: f32[1,128], index: 3, kind: input, shape index: {}]   ;;  %s278_s4 = inlined_call_operand.vmem [shape: bf16[8,128], index: 4, kind: output, shape index: {}]  }
   0x1   :  { %179 = vmatprep.subr.bf16.mxu0 %v211_v0  ;;  %v201_v1 = vld [vmem:[%s274_s1] sm:$0xff]   ;;  %195 = vmatprep.mubr.msk.bf16.mxu0 %vm212_vm0, %v211_v0  ;;  %v202_v2 = vld [vmem:[%s274_s1 + $0x8] sm:$0xff]   ;;  %v203_v3 = vld [vmem:[%s274_s1 + $0x10] sm:$0xff]  }
   0x2   :  { %180 = vmatpush3.bf16.msra.mxu0 %v201_v1  ;;  %v204_v4 = vld [vmem:[%s274_s1 + $0x18] sm:$0xff]   ;;  %v205_v5 = vld [vmem:[%s274_s1 + $0x20] sm:$0xff]   ;;  %v206_v6 = vld [vmem:[%s274_s1 + $0x28] sm:$0xff]   ;;  %v128_v15 = vand.u32 127, %v127_v14 }
   0x3   :  { %181 = vmatprep.subr.bf16.mxu0 %v211_v0  ;;  %v207_v7 = vld [vmem:[%s274_s1 + $0x30] sm:$0xff]   ;;  %v208_v8 = vld [vmem:[%s274_s1 + $0x38] sm:$0xff]   ;;  %v18_v9 = vld [vmem:[%s275_s0] sm:$0xf] }
   0x4   :  { %vm129_vm1 = vcmp.lt.s32.totalorder %v128_v15, 32  ;;  %v168_v25 = vld [vmem:[%s276_s2] ss:$0 sm:$0xff] }
   0x5   :  { %v169_v27 = vld [vmem:[%s277_s3] ss:$0 sm:$0xff] }
   0x6   :  { %182 = vmatpush3.bf16.msra.mxu0 %v202_v2 }
   0x7   :  { %183 = vmatprep.subr.bf16.mxu0 %v211_v0 }
   0xa   :  { %184 = vmatpush3.bf16.msra.mxu0 %v203_v3 }
   0xb   :  { %185 = vmatprep.subr.bf16.mxu0 %v211_v0 }
   0xe   :  { %186 = vmatpush3.bf16.msra.mxu0 %v204_v4 }
   0xf   :  { %187 = vmatprep.subr.bf16.mxu0 %v211_v0 }
  0x12   :  { %188 = vmatpush3.bf16.msra.mxu0 %v205_v5 }
  0x13   :  { %189 = vmatprep.subr.bf16.mxu0 %v211_v0 }
  0x16   :  { %190 = vmatpush3.bf16.msra.mxu0 %v206_v6 }
  0x17   :  { %191 = vmatprep.subr.bf16.mxu0 %v211_v0 }
  0x1a   :  { %192 = vmatpush3.bf16.msra.mxu0 %v207_v7 }
  0x1b   :  { %193 = vmatprep.subr.bf16.mxu0 %v211_v0 }
  0x1e   :  { %194 = vmatpush3.bf16.msra.mxu0 %v208_v8 }
  0x21   :  { %196 = vmatmul.mubr.bf16.vlgmr.msra.gmra.mrb[0].mxu0 %v18_v9 }
  0xf4   :  { %v117_v10 = vpop.f32.mrb[0].mxu0 }
  0xf5   :  { %123 = vadd.xlane.f32.xlu0 %v117_v10  ;;  %v197_v11 = vpop.f32.mrb[1].mxu0 }
  0xf6   :  { %v120_v12 = vpop.f32.mrb[2].mxu0 }
  0xf7   :  { %v198_v13 = vpop.f32.mrb[3].mxu0 }
 0x182   :  { %v124_v16 = vpop.xlane.xlu0 %123 }
 0x183   :  { %v125_v17 = vmul.f32 0.03125, %v124_v16 }
 0x185   :  { %v126_v18 = vsub.f32 %v117_v10, %v125_v17 }
 0x187   :  { %v130_v19 = vsel %vm129_vm1, %v126_v18, 0.0 }
 0x188   :  { %v131_v20 = vmul.f32 %v130_v19, %v130_v19 }
 0x18a   :  { %132 = vadd.xlane.f32.xlu0 %v131_v20 }
 0x217   :  { %v133_v21 = vpop.xlane.xlu0 %132 }
 0x218   :  { %v134_v22 = vmul.f32 0.03125, %v133_v21 }
 0x21a   :  { %v135_v23 = vadd.f32 1e-06, %v134_v22 }
 0x21c   :  { %209 = vrsqrt.f32 %v135_v23 }
 0x226   :  { %v210_v24 = vpop.eup %209 }
 0x227   :  { %v137_v26 = vmul.f32 %v210_v24, %v130_v19 }
 0x229   :  { %v145_v28 = vmul.f32 %v168_v25, %v137_v26 }
 0x22b   :  { %v153_v29 = vadd.f32 %v169_v27, %v145_v28 }
 0x22d   :  { %v154_v30 = vpack.c.bf16 %v153_v29, %v153_v29 }
 0x22f   :  { %155 = vst [vmem:[%s278_s4] sm:$0xf] %v154_v30 }

// kernel: _lambda_.33
= control target key start
LH: loop header
LB: loop body
LE: loop exit
PB: predicated region body
PF: predicated region fallthrough
CT: control target
= control target key end

     0   :  { %v486_v1 = vmov 0.0   ;;  %vm487_vm0 = vmmov 0   ;;  %s610_s0 = inlined_call_operand.vmem [shape: bf16[8,384], index: 0, kind: input, shape index: {}]   ;;  %s611_s1 = inlined_call_operand.vmem [shape: bf16[384,128], index: 1, kind: input, shape index: {}]   ;;  %s612_s2 = inlined_call_operand.vmem [shape: f32[1,128], index: 2, kind: input, shape index: {}]   ;;  %s613_s3 = inlined_call_operand.vmem [shape: f32[1,128], index: 3, kind: input, shape index: {}]   ;;  %s614_s4 = inlined_call_operand.hbm [shape: f32[8,128], index: 4, kind: output, shape index: {}]  }
   0x1   :  { %v433_v0 = vld [vmem:[%s611_s1 + $0x40] sm:$0xff]   ;;  %410 = vmatprep.subr.bf16.mxu1 %v486_v1  ;;  %426 = vmatprep.mubr.msk.bf16.mxu1 %vm487_vm0, %v486_v1  ;;  %v436_v4 = vld [vmem:[%s611_s1 + $0x48] sm:$0xff]   ;;  %v439_v7 = vld [vmem:[%s611_s1 + $0x50] sm:$0xff]  }
   0x2   :  { %v434_v2 = vld [vmem:[%s611_s1] sm:$0xff]   ;;  %379 = vmatprep.subr.bf16.mxu0 %v433_v0  ;;  %v437_v5 = vld [vmem:[%s611_s1 + $0x8] sm:$0xff]   ;;  %v440_v8 = vld [vmem:[%s611_s1 + $0x10] sm:$0xff]  }
   0x3   :  { %v435_v3 = vld [vmem:[%s611_s1 + $0x80] sm:$0xff]   ;;  %380 = vmatpush3.bf16.msra.mxu0 %v434_v2  ;;  %v438_v6 = vld [vmem:[%s611_s1 + $0x88] sm:$0xff]   ;;  %v441_v9 = vld [vmem:[%s611_s1 + $0x90] sm:$0xff]  }
   0x4   :  { %411 = vmatpush3.bf16.msra.mxu1 %v435_v3  ;;  %381 = vmatprep.subr.bf16.mxu0 %v436_v4  ;;  %v442_v10 = vld [vmem:[%s611_s1 + $0x58] sm:$0xff]   ;;  %v445_v13 = vld [vmem:[%s611_s1 + $0x60] sm:$0xff]   ;;  %v448_v16 = vld [vmem:[%s611_s1 + $0x68] sm:$0xff]  }
   0x5   :  { %412 = vmatprep.subr.bf16.mxu1 %v486_v1  ;;  %v443_v11 = vld [vmem:[%s611_s1 + $0x18] sm:$0xff]   ;;  %v446_v14 = vld [vmem:[%s611_s1 + $0x20] sm:$0xff]   ;;  %v449_v17 = vld [vmem:[%s611_s1 + $0x28] sm:$0xff]  }
   0x6   :  { %v444_v12 = vld [vmem:[%s611_s1 + $0x98] sm:$0xff]   ;;  %v447_v15 = vld [vmem:[%s611_s1 + $0xa0] sm:$0xff]   ;;  %v450_v18 = vld [vmem:[%s611_s1 + $0xa8] sm:$0xff]  }
   0x7   :  { %382 = vmatpush3.bf16.msra.mxu0 %v437_v5  ;;  %v451_v19 = vld [vmem:[%s611_s1 + $0x70] sm:$0xff]   ;;  %v454_v22 = vld [vmem:[%s611_s1 + $0x78] sm:$0xff]   ;;  %v19_v23 = vld [vmem:[%s610_s0] sm:$0xff] }
   0x8   :  { %413 = vmatpush3.bf16.msra.mxu1 %v438_v6  ;;  %383 = vmatprep.subr.bf16.mxu0 %v439_v7  ;;  %v452_v20 = vld [vmem:[%s611_s1 + $0x30] sm:$0xff]   ;;  %v351_v24 = vcombine.high %v19_v23, %v19_v23 }
   0x9   :  { %414 = vmatprep.subr.bf16.mxu1 %v486_v1  ;;  %v453_v21 = vld [vmem:[%s611_s1 + $0xb0] sm:$0xff]  }
   0xb   :  { %384 = vmatpush3.bf16.msra.mxu0 %v440_v8 }
   0xc   :  { %415 = vmatpush3.bf16.msra.mxu1 %v441_v9  ;;  %385 = vmatprep.subr.bf16.mxu0 %v442_v10 }
   0xd   :  { %416 = vmatprep.subr.bf16.mxu1 %v486_v1 }
   0xf   :  { %386 = vmatpush3.bf16.msra.mxu0 %v443_v11 }
  0x10   :  { %417 = vmatpush3.bf16.msra.mxu1 %v444_v12  ;;  %387 = vmatprep.subr.bf16.mxu0 %v445_v13 }
  0x11   :  { %418 = vmatprep.subr.bf16.mxu1 %v486_v1 }
  0x13   :  { %388 = vmatpush3.bf16.msra.mxu0 %v446_v14 }
  0x14   :  { %419 = vmatpush3.bf16.msra.mxu1 %v447_v15  ;;  %389 = vmatprep.subr.bf16.mxu0 %v448_v16 }
  0x15   :  { %420 = vmatprep.subr.bf16.mxu1 %v486_v1 }
  0x17   :  { %390 = vmatpush3.bf16.msra.mxu0 %v449_v17 }
  0x18   :  { %421 = vmatpush3.bf16.msra.mxu1 %v450_v18  ;;  %391 = vmatprep.subr.bf16.mxu0 %v451_v19 }
  0x19   :  { %422 = vmatprep.subr.bf16.mxu1 %v486_v1 }
  0x1a   :  { %9 = vsyncpa [#allocation3], 0  ;;  %v455_v25 = vld [vmem:[%s611_s1 + $0x38] sm:$0xff]   ;;  %256 = vmatprep.mubr.bf16.mxu0 %v351_v24  ;;  %v350_v27 = vcombine.low %v19_v23, %v19_v23  ;;  %v459_v28 = vld [vmem:[%s610_s0 + $0x8] ss:$0 sps:$4 sm:$0xff]   ;;  %v308_v39 = vlaneseq  ;;  %s488_s17 = smov [#allocation2]  }
  0x1b   :  { %392 = vmatpush3.bf16.msra.mxu0 %v452_v20  ;;  %v456_v26 = vld [vmem:[%s611_s1 + $0xb8] sm:$0xff]   ;;  %v377_v50 = vld [vmem:[%s612_s2] ss:$0 sm:$0xff]  ;;  %s342_s18 = sshll.u32 %s488_s17, 4  ;;  %s343_s18 = int_to_ptr.vmem [resolvable:$true] %s342_s18 }
  0x1c   :  { %423 = vmatpush3.bf16.msra.mxu1 %v453_v21  ;;  %393 = vmatprep.subr.bf16.mxu0 %v454_v22  ;;  %v309_v40 = vand.u32 127, %v308_v39  ;;  %v378_v52 = vld [vmem:[%s613_s3] ss:$0 sm:$0xff]  ;;  %s462_s19 = scalar_lea.vmem %s343_s18, 128  ;;  %p467_p1 = scmp.lt.s32.totalorder %s343_s18, %s343_s18 }
  0x1d   :  { %424 = vmatprep.subr.bf16.mxu1 %v486_v1  ;;  %p463_p0 = scmp.ne.s32.totalorder %s343_s18, %s462_s19  ;;  %p468_p2 = scmp.lt.s32.totalorder %s462_s19, %s462_s19 }
  0x1e   :  { %vm310_vm1 = vcmp.lt.s32.totalorder %v309_v40, 32 }
  0x1f   :  { %394 = vmatpush3.bf16.msra.mxu0 %v455_v25  ;;  %p469_p3 = por %p468_p2, %p467_p1 }
  0x20   :  { %425 = vmatpush3.bf16.msra.mxu1 %v456_v26 }
  0x21   :  { %p470_p4 = pnand %p469_p3, %p463_p0 }
  0x22   :  { %257 = vmatmul.mubr.bf16.vlgmr.msra.gmra.mrb[0].mxu0 %v350_v27 }
  0x23   :  { %427 = vmatmul.mubr.bf16.vlgmr.msra.gmra.mrb[0].mxu1 %v459_v28 }
  0xf5   :  { %v395_v29 = vpop.f32.mrb[0].mxu0 }
  0xf6   :  { %v298_v30 = vpop.f32.mrb[0].mxu1  ;;  %v396_v31 = vpop.f32.mrb[1].mxu0 }
  0xf7   :  { %v397_v32 = vadd.f32 %v396_v31, %v395_v29  ;;  %v428_v33 = vpop.f32.mrb[1].mxu1  ;;  %v398_v34 = vpop.f32.mrb[2].mxu0 }
  0xf8   :  { %v301_v35 = vpop.f32.mrb[2].mxu1  ;;  %v399_v36 = vpop.f32.mrb[3].mxu0 }
  0xf9   :  { %v429_v37 = vpop.f32.mrb[3].mxu1  ;;  %v299_v38 = vadd.f32 %v397_v32, %v298_v30 }
  0xfb   :  { %304 = vadd.xlane.f32.xlu0 %v299_v38 }
 0x188   :  { %v305_v41 = vpop.xlane.xlu0 %304 }
 0x189   :  { %v306_v42 = vmul.f32 0.03125, %v305_v41 }
 0x18b   :  { %v307_v43 = vsub.f32 %v299_v38, %v306_v42 }
 0x18d   :  { %v311_v44 = vsel %vm310_vm1, %v307_v43, 0.0 }
 0x18e   :  { %v312_v45 = vmul.f32 %v311_v44, %v311_v44 }
 0x190   :  { %313 = vadd.xlane.f32.xlu0 %v312_v45 }
 0x21d   :  { %v314_v46 = vpop.xlane.xlu0 %313 }
 0x21e   :  { %v315_v47 = vmul.f32 0.03125, %v314_v46 }
 0x220   :  { %v316_v48 = vadd.f32 1e-06, %v315_v47 }
 0x222   :  { %460 = vrsqrt.f32 %v316_v48 }
 0x22c   :  { %v461_v49 = vpop.eup %460 }
 0x22d   :  { %v318_v51 = vmul.f32 %v461_v49, %v311_v44 }
 0x22f   :  { %v326_v53 = vmul.f32 %v377_v50, %v318_v51 }
 0x231   :  { %v334_v54 = vadd.f32 %v378_v52, %v326_v53 }
 0x233   :  { %335 = vst [vmem:[#allocation2] sm:$0xff] %v334_v54 }
 0x234   :  { %473 = shalt.err (!%p470_p4)
}
 0x235   :  { %s474_s21 = scalar_lea.hbm %s614_s4, 128 }
 0x236   :  { %p475_p5 = scmp.ne.s32.totalorder %s614_s4, %s474_s21  ;;  %p478_p6 = scmp.lt.u32.totalorder %s474_s21, %s614_s4 }
 0x238   :  { %p480_p7 = pnand %p478_p6, %p475_p5 }
 0x23a   :  { %483 = shalt.err (!%p480_p7)
}
 0x23b   :  { %345 = dma.vmem_to_hbm [thread:$0]  %s343_s18, 128, %s614_s4, [#allocation3]  }
 0x23c   :  { %484 = dma.done.wait [#allocation3], 128  }
 0x23d   :  { %485 = vsyncadd [#allocation3], 4294967168 }
 0x23e   :  { %349 = vsyncpa [#allocation3], 1 }

</bundles_post_ra>
